<compile_context>
chip_gen: v7x
topology: tpu7x:2x2x1
jax: 0.10.0
libtpu: 0.0.40
codegen_flags: <defaults>
</compile_context>

<pallas_src>
import jax
import jax.numpy as jnp
from jax.experimental import pallas as pl
from jax.experimental.pallas import tpu as pltpu

ENC_DIM = 256   # encoder_dim
FILT = 256      # predictor_filter_size
KS = 3          # predictor_kernel_size
LN_EPS = 1e-5   # torch.nn.LayerNorm default eps

T_TILE = 512    # mel-axis tile (and bucket) for the expansion kernel

# bf16 MXU operands with f32 accumulation for the six conv matmuls (the
# predictor kernel is MXU-bound; LayerNorm stats stay f32 so drift is bounded).
USE_BF16_MXU = True

# Expansion-kernel output dtype.  jnp.bfloat16 halves HBM write traffic of the
# (N, T, 256) output (the expansion kernel is HBM-write bound); kept f32 for
# exact parity with the reference.
EXPAND_DTYPE = jnp.float32

PREDICTOR_ROW_TARGET = 1024          # rows (b_tile*L) per predictor block
PREDICTOR_VMEM_LIMIT = 32 * 1024 * 1024


def _mxu_dot(a, b):
    if USE_BF16_MXU:
        a = a.astype(jnp.bfloat16)
        b = b.astype(jnp.bfloat16)
    return jnp.dot(a, b, preferred_element_type=jnp.float32)


def _layer_norm(h, gamma, beta):
    mean = jnp.mean(h, axis=-1, keepdims=True)
    var = jnp.mean(jnp.square(h - mean), axis=-1, keepdims=True)
    return (h - mean) * jax.lax.rsqrt(var + LN_EPS) * gamma + beta


# ----------------------------------------------------------------------------
# Kernel 1: duration predictor, b_tile batch elements per grid step.
# Each conv is three tall (b_tile*L, C) @ (C, F) MXU matmuls; the +/-1 time
# shifts are sublane rolls with sequence-boundary masks (no padded input, no
# inter-conv scratch).  Dropout(0.1) is identity in eval mode.
# ----------------------------------------------------------------------------
def _duration_predictor_kernel(x_ref, w1_ref, b1_ref, g1_ref, be1_ref,
                               w2_ref, b2_ref, g2_ref, be2_ref,
                               wl_ref, bl_ref, out_ref):
    B, L, C = x_ref.shape
    BL = B * L
    Fdim = w1_ref.shape[2]

    X = x_ref[...].reshape(BL, C)

    # Time index within each sequence; masks zero the rows where the sublane
    # roll would otherwise wrap across a sequence boundary (== the conv's zero
    # padding at t=-1 / t=L).
    t_idx = jax.lax.broadcasted_iota(jnp.int32, (BL, 1), 0) % L
    not_first = t_idx != 0
    not_last = t_idx != (L - 1)

    def conv3(src, w_ref, b_ref):
        prev = jnp.where(not_first, pltpu.roll(src, 1, axis=0), 0.0)       # x[t-1]
        nxt = jnp.where(not_last, pltpu.roll(src, BL - 1, axis=0), 0.0)    # x[t+1]
        out = (_mxu_dot(prev, w_ref[0]) + _mxu_dot(src, w_ref[1])
               + _mxu_dot(nxt, w_ref[2]))
        return out + b_ref[0]

    h = conv3(X, w1_ref, b1_ref)
    h = jnp.maximum(_layer_norm(h, g1_ref[0], be1_ref[0]), 0.0)   # ReLU; dropout=id

    h2 = conv3(h, w2_ref, b2_ref)
    h2 = jnp.maximum(_layer_norm(h2, g2_ref[0], be2_ref[0]), 0.0)

    # Linear(F -> 1) + ReLU as a VPU multiply + lane reduce (matches squeeze(-1)).
    out = jnp.sum(h2.reshape(B, L, Fdim) * wl_ref[0], axis=-1) + bl_ref[...]
    out_ref[0] = jnp.maximum(out, 0.0)


def _rep_spec(shape):
    nd = len(shape)
    return pl.BlockSpec(shape, lambda n, _nd=nd: (0,) * _nd)


def _pick_b_tile(N, L, row_target=PREDICTOR_ROW_TARGET):
    """Largest divisor of N with b_tile*L <= row_target; when N >= 16 keep the
    grid at >= 2 steps so the 'parallel' axis can be sharded across v7x's two
    TensorCores.  Never falls back to one huge block."""
    max_b = N if N < 16 else N // 2
    best = 1
    for b in range(1, max_b + 1):
        if N % b == 0 and b * L <= row_target:
            best = b
    return best


def duration_predictor_forward(x, params):
    N, L, C = x.shape
    b_tile = _pick_b_tile(N, L)
    nb = N // b_tile
    out = pl.pallas_call(
        _duration_predictor_kernel,
        out_shape=jax.ShapeDtypeStruct((nb, b_tile, L), jnp.float32),
        grid=(nb,),
        in_specs=[
            pl.BlockSpec((b_tile, L, C), lambda n: (n, 0, 0)),
            _rep_spec((KS, ENC_DIM, FILT)),   # w1
            _rep_spec((1, FILT)),             # b1
            _rep_spec((1, FILT)),             # ln1 gamma
            _rep_spec((1, FILT)),             # ln1 beta
            _rep_spec((KS, FILT, FILT)),      # w2
            _rep_spec((1, FILT)),             # b2
            _rep_spec((1, FILT)),             # ln2 gamma
            _rep_spec((1, FILT)),             # ln2 beta
            _rep_spec((1, FILT)),             # linear weight (row)
            _rep_spec((1, 1)),                # linear bias
        ],
        out_specs=pl.BlockSpec((1, b_tile, L), lambda n: (n, 0, 0)),
        compiler_params=pltpu.CompilerParams(
            dimension_semantics=("parallel",),
            vmem_limit_bytes=PREDICTOR_VMEM_LIMIT),
    )(x.astype(jnp.float32),
      params["w1"], params["b1"], params["g1"], params["be1"],
      params["w2"], params["b2"], params["g2"], params["be2"],
      params["wl"], params["bl"])
    return out.reshape(N, L)                  # matches squeeze(-1)


# ----------------------------------------------------------------------------
# Kernel 2: length expansion.  The one-hot alignment tile is rebuilt in-kernel
# from the per-sequence duration cumsums, so no N x T x L array ever touches
# HBM; rows past a sequence's total duration come out zero (same as the
# reference's zero alignment rows / F.pad rows).
# ----------------------------------------------------------------------------
def _expand_kernel(cum_ref, x_ref, o_ref):
    tT = o_ref.shape[1]
    L = x_ref.shape[1]
    t0 = pl.program_id(1) * tT
    tg = t0 + jax.lax.broadcasted_iota(jnp.int32, (tT, L), 0)   # global frame per row
    cs = cum_ref[0, 0:1, :]      # (1, L) inclusive cumsum
    csx = cum_ref[0, 1:2, :]     # (1, L) exclusive cumsum
    onehot = jnp.logical_and(tg >= csx, tg < cs).astype(jnp.float32)   # (tT, L)
    o_ref[0] = jnp.dot(onehot, x_ref[0],
                       preferred_element_type=jnp.float32).astype(o_ref.dtype)


def expand_forward(durations, x, t_pad, t_tile=T_TILE):
    """durations: (N, L) int32 on device.  Returns (N, t_pad, C); rows past a
    sequence's total duration are zero."""
    N, L = durations.shape
    _, _, C = x.shape
    assert t_pad % t_tile == 0
    d = durations.astype(jnp.int32)
    cs = jnp.cumsum(d, axis=-1)                      # inclusive
    cum = jnp.stack([cs, cs - d], axis=1)            # (N, 2, L): inclusive / exclusive
    return pl.pallas_call(
        _expand_kernel,
        out_shape=jax.ShapeDtypeStruct((N, t_pad, C), EXPAND_DTYPE),
        grid=(N, t_pad // t_tile),
        in_specs=[
            pl.BlockSpec((1, 2, L), lambda n, t: (n, 0, 0)),
            pl.BlockSpec((1, L, C), lambda n, t: (n, 0, 0)),
        ],
        out_specs=pl.BlockSpec((1, t_tile, C), lambda n, t: (n, t, 0)),
        compiler_params=pltpu.CompilerParams(
            dimension_semantics=("parallel", "parallel")),
    )(cum, x.astype(jnp.float32))


class LengthRegulator:
    """JAX/Pallas port of the PyTorch LengthRegulator (eval mode)."""

    def __init__(self, key):
        ks = jax.random.split(key, 3)
        s = 0.02
        self.params = {
            "w1": jax.random.normal(ks[0], (KS, ENC_DIM, FILT), jnp.float32) * s,
            "b1": jnp.zeros((1, FILT), jnp.float32),
            "g1": jnp.ones((1, FILT), jnp.float32),
            "be1": jnp.zeros((1, FILT), jnp.float32),
            "w2": jax.random.normal(ks[1], (KS, FILT, FILT), jnp.float32) * s,
            "b2": jnp.zeros((1, FILT), jnp.float32),
            "g2": jnp.ones((1, FILT), jnp.float32),
            "be2": jnp.zeros((1, FILT), jnp.float32),
            "wl": jax.random.normal(ks[2], (1, FILT), jnp.float32) * s,
            "bl": jnp.full((1, 1), 0.7, jnp.float32),  # keeps predicted durations > 0
        }

    def duration_predictor(self, x):
        return duration_predictor_forward(x, self.params)

    def LR(self, x, duration_predictor_output, mel_max_length=None):
        dur = jnp.maximum(jnp.asarray(duration_predictor_output).astype(jnp.int32), 0)
        if mel_max_length:
            # Static output length: no host sync, no slice-then-pad.  The kernel
            # writes zeros past each sequence's total duration (== the reference's
            # zero alignment rows / F.pad), and frames past mel_max_length are
            # never computed.
            t_out = int(mel_max_length)
        else:
            # Data-dependent output length: one scalar host sync (as in the
            # reference, which sizes the alignment from expand_max_len).
            t_out = max(int(jax.device_get(jnp.max(jnp.sum(dur, axis=-1)))), 1)
        t_pad = -(-t_out // T_TILE) * T_TILE          # bucketed -> few recompiles
        output = expand_forward(dur, x, t_pad, T_TILE)
        if t_pad != t_out:
            output = output[:, :t_out, :]             # single slice, never slice+pad
        return output

    def forward(self, x, alpha=1.0, target=None, mel_max_length=None):
        duration_predictor_output = self.duration_predictor(x)
        if target is not None:
            output = self.LR(x, target, mel_max_length)
            return output, duration_predictor_output
        # Inference path: durations derived from the predictor, entirely on device.
        d = (jnp.exp(duration_predictor_output) - 1.0) * alpha + 0.5
        d = jnp.maximum(d, 0.0).astype(jnp.int32)     # trunc == .int() + clamp(>=0)
        output = self.LR(x, d)
        mel_pos = jnp.arange(1, output.shape[1] + 1, dtype=jnp.int32)[None, :]
        return output, mel_pos


if __name__ == "__main__":
    key = jax.random.PRNGKey(0)
    k_param, k_x, k_t = jax.random.split(key, 3)

    N, L = 2, 8
    x = jax.random.normal(k_x, (N, L, ENC_DIM), dtype=jnp.float32)

    regulator = LengthRegulator(k_param)

    # Training-style path: ground-truth durations provided.
    target = jax.random.randint(k_t, (N, L), 1, 4, dtype=jnp.int32)
    out_t, dpo = regulator.forward(x, target=target, mel_max_length=32)
    jax.block_until_ready((out_t, dpo))
    assert out_t.shape == (N, 32, ENC_DIM)
    assert dpo.shape == (N, L)

    # Inference path: durations derived from the predictor itself.
    out_i, mel_pos = regulator.forward(x, alpha=1.0)
    jax.block_until_ready((out_i, mel_pos))
    assert out_i.shape[0] == N and out_i.shape[2] == ENC_DIM
    assert mel_pos.shape == (1, out_i.shape[1])

    print("KERNEL_OK")
</pallas_src>

<mosaic_0001>
module attributes {stable_mosaic.version = 11 : i64} {
  func.func @_duration_predictor_kernel(%arg0: i32, %arg1: memref<2x8x256xf32, #tpu.memory_space<vmem>>, %arg2: memref<3x256x256xf32, #tpu.memory_space<vmem>>, %arg3: memref<1x256xf32, #tpu.memory_space<vmem>>, %arg4: memref<1x256xf32, #tpu.memory_space<vmem>>, %arg5: memref<1x256xf32, #tpu.memory_space<vmem>>, %arg6: memref<3x256x256xf32, #tpu.memory_space<vmem>>, %arg7: memref<1x256xf32, #tpu.memory_space<vmem>>, %arg8: memref<1x256xf32, #tpu.memory_space<vmem>>, %arg9: memref<1x256xf32, #tpu.memory_space<vmem>>, %arg10: memref<1x256xf32, #tpu.memory_space<vmem>>, %arg11: memref<1x1xf32, #tpu.memory_space<vmem>>, %arg12: memref<1x2x8xf32, #tpu.memory_space<vmem>>) attributes {dimension_semantics = [#tpu.dimension_semantics<parallel>], iteration_bounds = array<i64: 1>, scalar_prefetch = 0 : i64, scratch_operands = 0 : i64, tpu.core_type = #tpu.core_type<tc>, window_params = [{transform_indices = @transform_0, window_bounds = array<i64: 2, 8, 256>}, {pipeline_mode = #tpu.pipeline_mode<synchronous>, transform_indices = @transform_1, window_bounds = array<i64: 3, 256, 256>}, {pipeline_mode = #tpu.pipeline_mode<synchronous>, transform_indices = @transform_2, window_bounds = array<i64: 1, 256>}, {pipeline_mode = #tpu.pipeline_mode<synchronous>, transform_indices = @transform_3, window_bounds = array<i64: 1, 256>}, {pipeline_mode = #tpu.pipeline_mode<synchronous>, transform_indices = @transform_4, window_bounds = array<i64: 1, 256>}, {pipeline_mode = #tpu.pipeline_mode<synchronous>, transform_indices = @transform_5, window_bounds = array<i64: 3, 256, 256>}, {pipeline_mode = #tpu.pipeline_mode<synchronous>, transform_indices = @transform_6, window_bounds = array<i64: 1, 256>}, {pipeline_mode = #tpu.pipeline_mode<synchronous>, transform_indices = @transform_7, window_bounds = array<i64: 1, 256>}, {pipeline_mode = #tpu.pipeline_mode<synchronous>, transform_indices = @transform_8, window_bounds = array<i64: 1, 256>}, {pipeline_mode = #tpu.pipeline_mode<synchronous>, transform_indices = @transform_9, window_bounds = array<i64: 1, 256>}, {pipeline_mode = #tpu.pipeline_mode<synchronous>, transform_indices = @transform_10, window_bounds = array<i64: 1, 1>}, {transform_indices = @transform_11, window_bounds = array<i64: 1, 2, 8>}]} {
    %c0 = arith.constant 0 : index
    %c0_0 = arith.constant 0 : index
    %c0_1 = arith.constant 0 : index
    %0 = vector.load %arg1[%c0, %c0_0, %c0_1] : memref<2x8x256xf32, #tpu.memory_space<vmem>>, vector<2x8x256xf32>
    %1 = vector.shape_cast %0 : vector<2x8x256xf32> to vector<16x256xf32>
    %2 = tpu.iota {dimensions = array<i32: 0>} : vector<16x1xi32>
    %c8_i32 = arith.constant 8 : i32
    %c0_i32 = arith.constant 0 : i32
    %3 = arith.cmpi eq, %c8_i32, %c0_i32 : i32
    %c1_i32 = arith.constant 1 : i32
    %4 = arith.select %3, %c1_i32, %c8_i32 : i32
    %5 = vector.broadcast %4 : i32 to vector<16x1xi32>
    %6 = arith.remsi %2, %5 : vector<16x1xi32>
    %c0_i32_2 = arith.constant 0 : i32
    %7 = vector.broadcast %c0_i32_2 : i32 to vector<16x1xi32>
    %8 = arith.cmpi ne, %6, %7 : vector<16x1xi32>
    %c0_i32_3 = arith.constant 0 : i32
    %9 = vector.broadcast %c0_i32_3 : i32 to vector<16x1xi32>
    %10 = arith.cmpi slt, %6, %9 : vector<16x1xi32>
    %c0_i32_4 = arith.constant 0 : i32
    %11 = arith.cmpi slt, %4, %c0_i32_4 : i32
    %12 = vector.broadcast %11 : i1 to vector<16x1xi1>
    %13 = vector.broadcast %12 : vector<16x1xi1> to vector<16x1xi1>
    %14 = arith.xori %10, %13 : vector<16x1xi1>
    %15 = arith.andi %14, %8 : vector<16x1xi1>
    %16 = vector.broadcast %4 : i32 to vector<16x1xi32>
    %17 = arith.addi %6, %16 : vector<16x1xi32>
    %18 = arith.select %15, %17, %6 : vector<16x1xi1>, vector<16x1xi32>
    %c0_i32_5 = arith.constant 0 : i32
    %19 = vector.broadcast %c0_i32_5 : i32 to vector<16x1xi32>
    %20 = arith.cmpi ne, %18, %19 : vector<16x1xi32>
    %c7_i32 = arith.constant 7 : i32
    %21 = vector.broadcast %c7_i32 : i32 to vector<16x1xi32>
    %22 = arith.cmpi ne, %18, %21 : vector<16x1xi32>
    %c1_i32_6 = arith.constant 1 : i32
    %23 = tpu.dynamic_rotate %1 by %c1_i32_6 dim 0 : vector<16x256xf32>, i32 -> vector<16x256xf32>
    %cst = arith.constant 0.000000e+00 : f32
    %24 = vector.shape_cast %20 : vector<16x1xi1> to vector<16x1xi1>
    %25 = vector.broadcast %24 : vector<16x1xi1> to vector<16x256xi1>
    %26 = vector.broadcast %cst : f32 to vector<16x256xf32>
    %27 = arith.select %25, %23, %26 : vector<16x256xi1>, vector<16x256xf32>
    %c15_i32 = arith.constant 15 : i32
    %28 = tpu.dynamic_rotate %1 by %c15_i32 dim 0 : vector<16x256xf32>, i32 -> vector<16x256xf32>
    %cst_7 = arith.constant 0.000000e+00 : f32
    %29 = vector.shape_cast %22 : vector<16x1xi1> to vector<16x1xi1>
    %30 = vector.broadcast %29 : vector<16x1xi1> to vector<16x256xi1>
    %31 = vector.broadcast %cst_7 : f32 to vector<16x256xf32>
    %32 = arith.select %30, %28, %31 : vector<16x256xi1>, vector<16x256xf32>
    %c0_8 = arith.constant 0 : index
    %c0_9 = arith.constant 0 : index
    %c0_10 = arith.constant 0 : index
    %33 = vector.load %arg2[%c0_8, %c0_9, %c0_10] : memref<3x256x256xf32, #tpu.memory_space<vmem>>, vector<1x256x256xf32>
    %34 = vector.shape_cast %33 : vector<1x256x256xf32> to vector<256x256xf32>
    %35 = arith.truncf %27 : vector<16x256xf32> to vector<16x256xbf16>
    %36 = arith.truncf %34 : vector<256x256xf32> to vector<256x256xbf16>
    %cst_11 = arith.constant dense<0.000000e+00> : vector<16x256xf32>
    %37 = tpu.matmul %35, %36, %cst_11 {dimension_numbers = #tpu.dot_dimension_numbers<[1], [0], [0], [1], [0, 0, 1, 1], [], []>} : vector<16x256xbf16>, vector<256x256xbf16>, vector<16x256xf32> -> vector<16x256xf32>
    %c1 = arith.constant 1 : index
    %c0_12 = arith.constant 0 : index
    %c0_13 = arith.constant 0 : index
    %38 = vector.load %arg2[%c1, %c0_12, %c0_13] : memref<3x256x256xf32, #tpu.memory_space<vmem>>, vector<1x256x256xf32>
    %39 = vector.shape_cast %38 : vector<1x256x256xf32> to vector<256x256xf32>
    %40 = arith.truncf %1 : vector<16x256xf32> to vector<16x256xbf16>
    %41 = arith.truncf %39 : vector<256x256xf32> to vector<256x256xbf16>
    %cst_14 = arith.constant dense<0.000000e+00> : vector<16x256xf32>
    %42 = tpu.matmul %40, %41, %cst_14 {dimension_numbers = #tpu.dot_dimension_numbers<[1], [0], [0], [1], [0, 0, 1, 1], [], []>} : vector<16x256xbf16>, vector<256x256xbf16>, vector<16x256xf32> -> vector<16x256xf32>
    %43 = arith.addf %37, %42 : vector<16x256xf32>
    %c2 = arith.constant 2 : index
    %c0_15 = arith.constant 0 : index
    %c0_16 = arith.constant 0 : index
    %44 = vector.load %arg2[%c2, %c0_15, %c0_16] : memref<3x256x256xf32, #tpu.memory_space<vmem>>, vector<1x256x256xf32>
    %45 = vector.shape_cast %44 : vector<1x256x256xf32> to vector<256x256xf32>
    %46 = arith.truncf %32 : vector<16x256xf32> to vector<16x256xbf16>
    %47 = arith.truncf %45 : vector<256x256xf32> to vector<256x256xbf16>
    %cst_17 = arith.constant dense<0.000000e+00> : vector<16x256xf32>
    %48 = tpu.matmul %46, %47, %cst_17 {dimension_numbers = #tpu.dot_dimension_numbers<[1], [0], [0], [1], [0, 0, 1, 1], [], []>} : vector<16x256xbf16>, vector<256x256xbf16>, vector<16x256xf32> -> vector<16x256xf32>
    %49 = arith.addf %43, %48 : vector<16x256xf32>
    %c0_18 = arith.constant 0 : index
    %c0_19 = arith.constant 0 : index
    %50 = vector.load %arg3[%c0_18, %c0_19] : memref<1x256xf32, #tpu.memory_space<vmem>>, vector<1x256xf32>
    %51 = vector.shape_cast %50 : vector<1x256xf32> to vector<256xf32>
    %52 = vector.shape_cast %51 : vector<256xf32> to vector<1x256xf32>
    %53 = vector.broadcast %52 : vector<1x256xf32> to vector<16x256xf32>
    %54 = arith.addf %49, %53 : vector<16x256xf32>
    %c0_20 = arith.constant 0 : index
    %c0_21 = arith.constant 0 : index
    %55 = vector.load %arg4[%c0_20, %c0_21] : memref<1x256xf32, #tpu.memory_space<vmem>>, vector<1x256xf32>
    %56 = vector.shape_cast %55 : vector<1x256xf32> to vector<256xf32>
    %c0_22 = arith.constant 0 : index
    %c0_23 = arith.constant 0 : index
    %57 = vector.load %arg5[%c0_22, %c0_23] : memref<1x256xf32, #tpu.memory_space<vmem>>, vector<1x256xf32>
    %58 = vector.shape_cast %57 : vector<1x256xf32> to vector<256xf32>
    %cst_24 = arith.constant dense<0.000000e+00> : vector<16xf32>
    %59 = vector.multi_reduction <add>, %54, %cst_24 [1] : vector<16x256xf32> to vector<16xf32>
    %60 = vector.shape_cast %59 : vector<16xf32> to vector<16x1xf32>
    %cst_25 = arith.constant 2.560000e+02 : f32
    %61 = vector.broadcast %cst_25 : f32 to vector<16x1xf32>
    %62 = arith.divf %60, %61 : vector<16x1xf32>
    %63 = vector.broadcast %62 : vector<16x1xf32> to vector<16x256xf32>
    %64 = arith.subf %54, %63 : vector<16x256xf32>
    %65 = arith.mulf %64, %64 : vector<16x256xf32>
    %cst_26 = arith.constant dense<0.000000e+00> : vector<16xf32>
    %66 = vector.multi_reduction <add>, %65, %cst_26 [1] : vector<16x256xf32> to vector<16xf32>
    %67 = vector.shape_cast %66 : vector<16xf32> to vector<16x1xf32>
    %cst_27 = arith.constant 2.560000e+02 : f32
    %68 = vector.broadcast %cst_27 : f32 to vector<16x1xf32>
    %69 = arith.divf %67, %68 : vector<16x1xf32>
    %70 = vector.broadcast %62 : vector<16x1xf32> to vector<16x256xf32>
    %71 = arith.subf %54, %70 : vector<16x256xf32>
    %cst_28 = arith.constant 9.99999974E-6 : f32
    %72 = vector.broadcast %cst_28 : f32 to vector<16x1xf32>
    %73 = arith.addf %69, %72 : vector<16x1xf32>
    %74 = math.rsqrt %73 : vector<16x1xf32>
    %75 = vector.broadcast %74 : vector<16x1xf32> to vector<16x256xf32>
    %76 = arith.mulf %71, %75 : vector<16x256xf32>
    %77 = vector.shape_cast %56 : vector<256xf32> to vector<1x256xf32>
    %78 = vector.broadcast %77 : vector<1x256xf32> to vector<16x256xf32>
    %79 = arith.mulf %76, %78 : vector<16x256xf32>
    %80 = vector.shape_cast %58 : vector<256xf32> to vector<1x256xf32>
    %81 = vector.broadcast %80 : vector<1x256xf32> to vector<16x256xf32>
    %82 = arith.addf %79, %81 : vector<16x256xf32>
    %cst_29 = arith.constant 0.000000e+00 : f32
    %83 = vector.broadcast %cst_29 : f32 to vector<16x256xf32>
    %84 = arith.maximumf %82, %83 : vector<16x256xf32>
    %c1_i32_30 = arith.constant 1 : i32
    %85 = tpu.dynamic_rotate %84 by %c1_i32_30 dim 0 : vector<16x256xf32>, i32 -> vector<16x256xf32>
    %cst_31 = arith.constant 0.000000e+00 : f32
    %86 = vector.shape_cast %20 : vector<16x1xi1> to vector<16x1xi1>
    %87 = vector.broadcast %86 : vector<16x1xi1> to vector<16x256xi1>
    %88 = vector.broadcast %cst_31 : f32 to vector<16x256xf32>
    %89 = arith.select %87, %85, %88 : vector<16x256xi1>, vector<16x256xf32>
    %c15_i32_32 = arith.constant 15 : i32
    %90 = tpu.dynamic_rotate %84 by %c15_i32_32 dim 0 : vector<16x256xf32>, i32 -> vector<16x256xf32>
    %cst_33 = arith.constant 0.000000e+00 : f32
    %91 = vector.shape_cast %22 : vector<16x1xi1> to vector<16x1xi1>
    %92 = vector.broadcast %91 : vector<16x1xi1> to vector<16x256xi1>
    %93 = vector.broadcast %cst_33 : f32 to vector<16x256xf32>
    %94 = arith.select %92, %90, %93 : vector<16x256xi1>, vector<16x256xf32>
    %c0_34 = arith.constant 0 : index
    %c0_35 = arith.constant 0 : index
    %c0_36 = arith.constant 0 : index
    %95 = vector.load %arg6[%c0_34, %c0_35, %c0_36] : memref<3x256x256xf32, #tpu.memory_space<vmem>>, vector<1x256x256xf32>
    %96 = vector.shape_cast %95 : vector<1x256x256xf32> to vector<256x256xf32>
    %97 = arith.truncf %89 : vector<16x256xf32> to vector<16x256xbf16>
    %98 = arith.truncf %96 : vector<256x256xf32> to vector<256x256xbf16>
    %cst_37 = arith.constant dense<0.000000e+00> : vector<16x256xf32>
    %99 = tpu.matmul %97, %98, %cst_37 {dimension_numbers = #tpu.dot_dimension_numbers<[1], [0], [0], [1], [0, 0, 1, 1], [], []>} : vector<16x256xbf16>, vector<256x256xbf16>, vector<16x256xf32> -> vector<16x256xf32>
    %c1_38 = arith.constant 1 : index
    %c0_39 = arith.constant 0 : index
    %c0_40 = arith.constant 0 : index
    %100 = vector.load %arg6[%c1_38, %c0_39, %c0_40] : memref<3x256x256xf32, #tpu.memory_space<vmem>>, vector<1x256x256xf32>
    %101 = vector.shape_cast %100 : vector<1x256x256xf32> to vector<256x256xf32>
    %102 = arith.truncf %84 : vector<16x256xf32> to vector<16x256xbf16>
    %103 = arith.truncf %101 : vector<256x256xf32> to vector<256x256xbf16>
    %cst_41 = arith.constant dense<0.000000e+00> : vector<16x256xf32>
    %104 = tpu.matmul %102, %103, %cst_41 {dimension_numbers = #tpu.dot_dimension_numbers<[1], [0], [0], [1], [0, 0, 1, 1], [], []>} : vector<16x256xbf16>, vector<256x256xbf16>, vector<16x256xf32> -> vector<16x256xf32>
    %105 = arith.addf %99, %104 : vector<16x256xf32>
    %c2_42 = arith.constant 2 : index
    %c0_43 = arith.constant 0 : index
    %c0_44 = arith.constant 0 : index
    %106 = vector.load %arg6[%c2_42, %c0_43, %c0_44] : memref<3x256x256xf32, #tpu.memory_space<vmem>>, vector<1x256x256xf32>
    %107 = vector.shape_cast %106 : vector<1x256x256xf32> to vector<256x256xf32>
    %108 = arith.truncf %94 : vector<16x256xf32> to vector<16x256xbf16>
    %109 = arith.truncf %107 : vector<256x256xf32> to vector<256x256xbf16>
    %cst_45 = arith.constant dense<0.000000e+00> : vector<16x256xf32>
    %110 = tpu.matmul %108, %109, %cst_45 {dimension_numbers = #tpu.dot_dimension_numbers<[1], [0], [0], [1], [0, 0, 1, 1], [], []>} : vector<16x256xbf16>, vector<256x256xbf16>, vector<16x256xf32> -> vector<16x256xf32>
    %111 = arith.addf %105, %110 : vector<16x256xf32>
    %c0_46 = arith.constant 0 : index
    %c0_47 = arith.constant 0 : index
    %112 = vector.load %arg7[%c0_46, %c0_47] : memref<1x256xf32, #tpu.memory_space<vmem>>, vector<1x256xf32>
    %113 = vector.shape_cast %112 : vector<1x256xf32> to vector<256xf32>
    %114 = vector.shape_cast %113 : vector<256xf32> to vector<1x256xf32>
    %115 = vector.broadcast %114 : vector<1x256xf32> to vector<16x256xf32>
    %116 = arith.addf %111, %115 : vector<16x256xf32>
    %c0_48 = arith.constant 0 : index
    %c0_49 = arith.constant 0 : index
    %117 = vector.load %arg8[%c0_48, %c0_49] : memref<1x256xf32, #tpu.memory_space<vmem>>, vector<1x256xf32>
    %118 = vector.shape_cast %117 : vector<1x256xf32> to vector<256xf32>
    %c0_50 = arith.constant 0 : index
    %c0_51 = arith.constant 0 : index
    %119 = vector.load %arg9[%c0_50, %c0_51] : memref<1x256xf32, #tpu.memory_space<vmem>>, vector<1x256xf32>
    %120 = vector.shape_cast %119 : vector<1x256xf32> to vector<256xf32>
    %cst_52 = arith.constant dense<0.000000e+00> : vector<16xf32>
    %121 = vector.multi_reduction <add>, %116, %cst_52 [1] : vector<16x256xf32> to vector<16xf32>
    %122 = vector.shape_cast %121 : vector<16xf32> to vector<16x1xf32>
    %cst_53 = arith.constant 2.560000e+02 : f32
    %123 = vector.broadcast %cst_53 : f32 to vector<16x1xf32>
    %124 = arith.divf %122, %123 : vector<16x1xf32>
    %125 = vector.broadcast %124 : vector<16x1xf32> to vector<16x256xf32>
    %126 = arith.subf %116, %125 : vector<16x256xf32>
    %127 = arith.mulf %126, %126 : vector<16x256xf32>
    %cst_54 = arith.constant dense<0.000000e+00> : vector<16xf32>
    %128 = vector.multi_reduction <add>, %127, %cst_54 [1] : vector<16x256xf32> to vector<16xf32>
    %129 = vector.shape_cast %128 : vector<16xf32> to vector<16x1xf32>
    %cst_55 = arith.constant 2.560000e+02 : f32
    %130 = vector.broadcast %cst_55 : f32 to vector<16x1xf32>
    %131 = arith.divf %129, %130 : vector<16x1xf32>
    %132 = vector.broadcast %124 : vector<16x1xf32> to vector<16x256xf32>
    %133 = arith.subf %116, %132 : vector<16x256xf32>
    %cst_56 = arith.constant 9.99999974E-6 : f32
    %134 = vector.broadcast %cst_56 : f32 to vector<16x1xf32>
    %135 = arith.addf %131, %134 : vector<16x1xf32>
    %136 = math.rsqrt %135 : vector<16x1xf32>
    %137 = vector.broadcast %136 : vector<16x1xf32> to vector<16x256xf32>
    %138 = arith.mulf %133, %137 : vector<16x256xf32>
    %139 = vector.shape_cast %118 : vector<256xf32> to vector<1x256xf32>
    %140 = vector.broadcast %139 : vector<1x256xf32> to vector<16x256xf32>
    %141 = arith.mulf %138, %140 : vector<16x256xf32>
    %142 = vector.shape_cast %120 : vector<256xf32> to vector<1x256xf32>
    %143 = vector.broadcast %142 : vector<1x256xf32> to vector<16x256xf32>
    %144 = arith.addf %141, %143 : vector<16x256xf32>
    %cst_57 = arith.constant 0.000000e+00 : f32
    %145 = vector.broadcast %cst_57 : f32 to vector<16x256xf32>
    %146 = arith.maximumf %144, %145 : vector<16x256xf32>
    %147 = vector.shape_cast %146 : vector<16x256xf32> to vector<2x8x256xf32>
    %c0_58 = arith.constant 0 : index
    %c0_59 = arith.constant 0 : index
    %148 = vector.load %arg10[%c0_58, %c0_59] : memref<1x256xf32, #tpu.memory_space<vmem>>, vector<1x256xf32>
    %149 = vector.shape_cast %148 : vector<1x256xf32> to vector<256xf32>
    %150 = vector.shape_cast %149 : vector<256xf32> to vector<1x1x256xf32>
    %151 = vector.broadcast %150 : vector<1x1x256xf32> to vector<2x8x256xf32>
    %152 = arith.mulf %147, %151 : vector<2x8x256xf32>
    %cst_60 = arith.constant dense<0.000000e+00> : vector<2x8xf32>
    %153 = vector.multi_reduction <add>, %152, %cst_60 [2] : vector<2x8x256xf32> to vector<2x8xf32>
    %c0_61 = arith.constant 0 : index
    %c0_62 = arith.constant 0 : index
    %154 = vector.load %arg11[%c0_61, %c0_62] : memref<1x1xf32, #tpu.memory_space<vmem>>, vector<1x1xf32>
    %155 = vector.broadcast %154 : vector<1x1xf32> to vector<2x8xf32>
    %156 = arith.addf %153, %155 : vector<2x8xf32>
    %cst_63 = arith.constant 0.000000e+00 : f32
    %157 = vector.broadcast %cst_63 : f32 to vector<2x8xf32>
    %158 = arith.maximumf %156, %157 : vector<2x8xf32>
    %c0_64 = arith.constant 0 : index
    %c0_65 = arith.constant 0 : index
    %c0_66 = arith.constant 0 : index
    %159 = vector.load %arg12[%c0_64, %c0_65, %c0_66] : memref<1x2x8xf32, #tpu.memory_space<vmem>>, vector<1x2x8xf32>
    %160 = vector.shape_cast %159 : vector<1x2x8xf32> to vector<2x8xf32>
    %161 = vector.shape_cast %158 : vector<2x8xf32> to vector<1x2x8xf32>
    tpu.vector_store %arg12[%c0_64, %c0_65, %c0_66], %161 {strides = array<i32>} : memref<1x2x8xf32, #tpu.memory_space<vmem>>, vector<1x2x8xf32>,
    return
  }
  func.func @transform_0(%arg0: i32) -> (i32, i32, i32) {
    %c0_i32 = arith.constant 0 : i32
    %c0_i32_0 = arith.constant 0 : i32
    %c0_i32_1 = arith.constant 0 : i32
    return %arg0, %c0_i32, %c0_i32_0 : i32, i32, i32
  }
  func.func @transform_1(%arg0: i32) -> (i32, i32, i32) {
    %c0_i32 = arith.constant 0 : i32
    %c0_i32_0 = arith.constant 0 : i32
    %c0_i32_1 = arith.constant 0 : i32
    %c0_i32_2 = arith.constant 0 : i32
    return %c0_i32, %c0_i32_0, %c0_i32_1 : i32, i32, i32
  }
  func.func @transform_2(%arg0: i32) -> (i32, i32) {
    %c0_i32 = arith.constant 0 : i32
    %c0_i32_0 = arith.constant 0 : i32
    %c0_i32_1 = arith.constant 0 : i32
    return %c0_i32, %c0_i32_0 : i32, i32
  }
  func.func @transform_3(%arg0: i32) -> (i32, i32) {
    %c0_i32 = arith.constant 0 : i32
    %c0_i32_0 = arith.constant 0 : i32
    %c0_i32_1 = arith.constant 0 : i32
    return %c0_i32, %c0_i32_0 : i32, i32
  }
  func.func @transform_4(%arg0: i32) -> (i32, i32) {
    %c0_i32 = arith.constant 0 : i32
    %c0_i32_0 = arith.constant 0 : i32
    %c0_i32_1 = arith.constant 0 : i32
    return %c0_i32, %c0_i32_0 : i32, i32
  }
  func.func @transform_5(%arg0: i32) -> (i32, i32, i32) {
    %c0_i32 = arith.constant 0 : i32
    %c0_i32_0 = arith.constant 0 : i32
    %c0_i32_1 = arith.constant 0 : i32
    %c0_i32_2 = arith.constant 0 : i32
    return %c0_i32, %c0_i32_0, %c0_i32_1 : i32, i32, i32
  }
  func.func @transform_6(%arg0: i32) -> (i32, i32) {
    %c0_i32 = arith.constant 0 : i32
    %c0_i32_0 = arith.constant 0 : i32
    %c0_i32_1 = arith.constant 0 : i32
    return %c0_i32, %c0_i32_0 : i32, i32
  }
  func.func @transform_7(%arg0: i32) -> (i32, i32) {
    %c0_i32 = arith.constant 0 : i32
    %c0_i32_0 = arith.constant 0 : i32
    %c0_i32_1 = arith.constant 0 : i32
    return %c0_i32, %c0_i32_0 : i32, i32
  }
  func.func @transform_8(%arg0: i32) -> (i32, i32) {
    %c0_i32 = arith.constant 0 : i32
    %c0_i32_0 = arith.constant 0 : i32
    %c0_i32_1 = arith.constant 0 : i32
    return %c0_i32, %c0_i32_0 : i32, i32
  }
  func.func @transform_9(%arg0: i32) -> (i32, i32) {
    %c0_i32 = arith.constant 0 : i32
    %c0_i32_0 = arith.constant 0 : i32
    %c0_i32_1 = arith.constant 0 : i32
    return %c0_i32, %c0_i32_0 : i32, i32
  }
  func.func @transform_10(%arg0: i32) -> (i32, i32) {
    %c0_i32 = arith.constant 0 : i32
    %c0_i32_0 = arith.constant 0 : i32
    %c0_i32_1 = arith.constant 0 : i32
    return %c0_i32, %c0_i32_0 : i32, i32
  }
  func.func @transform_11(%arg0: i32) -> (i32, i32, i32) {
    %c0_i32 = arith.constant 0 : i32
    %c0_i32_0 = arith.constant 0 : i32
    %c0_i32_1 = arith.constant 0 : i32
    return %arg0, %c0_i32, %c0_i32_0 : i32, i32, i32
  }
}

</mosaic_0001>

<bundles_post_ra>
// kernel: tpu_custom_call.1
= control target key start
LH: loop header
LB: loop body
LE: loop exit
PB: predicated region body
PF: predicated region fallthrough
CT: control target
= control target key end

     0   :  { %s1770_s0 = inlined_call_operand.hbm [shape: f32[2,8,256], index: 0, kind: input, shape index: {}]   ;;  %s1771_s1 = inlined_call_operand.hbm [shape: f32[3,256,256], index: 1, kind: input, shape index: {}]   ;;  %s1772_s2 = inlined_call_operand.vmem [shape: f32[1,256], index: 2, kind: input, shape index: {}]   ;;  %s1773_s3 = inlined_call_operand.vmem [shape: f32[1,256], index: 3, kind: input, shape index: {}]   ;;  %s1774_s4 = inlined_call_operand.vmem [shape: f32[1,256], index: 4, kind: input, shape index: {}]   ;;  %s1775_s5 = inlined_call_operand.hbm [shape: f32[3,256,256], index: 5, kind: input, shape index: {}]   ;;  %s1776_s6 = inlined_call_operand.vmem [shape: f32[1,256], index: 6, kind: input, shape index: {}]   ;;  %s1777_s7 = inlined_call_operand.vmem [shape: f32[1,256], index: 7, kind: input, shape index: {}]   ;;  %s1778_s8 = inlined_call_operand.vmem [shape: f32[1,256], index: 8, kind: input, shape index: {}]   ;;  %s1779_s9 = inlined_call_operand.vmem [shape: f32[1,256], index: 9, kind: input, shape index: {}]   ;;  %s1780_s10 = inlined_call_operand.<no memory space> [shape: f32[1,1], index: 10, kind: input, shape index: {}]   ;;  %s1781_s11 = inlined_call_operand.hbm [shape: f32[1,2,8], index: 11, kind: output, shape index: {}]  }
   0x1   :  { %v16_v0 = vstv %s1780_s10 }
   0x2   :  { %17 = vst [vmem:[#allocation2] sm:$0x1] %v16_v0 }
   0x3   :  { %18 = vsyncpa [#allocation4], 0 }
   0x4   :  { %19 = vsyncpa [#allocation7], 0 }
   0x5   :  { %20 = vsyncpa [#allocation5], 0  ;;  %s1422_s19 = smov [#allocation6]   ;;  %s1423_s21 = smov [#allocation3]  }
   0x6   :  { %s38_s20 = sshll.u32 %s1422_s19, 4  ;;  %s26_s22 = sshll.u32 %s1423_s21, 4  ;;  %s39_s20 = int_to_ptr.vmem [resolvable:$true] %s38_s20  ;;  %s1492_s22 = int_to_ptr.vmem [resolvable:$true] %s26_s22 }
   0x7   :  { %s1328_s25 = scalar_lea.hbm %s1771_s1, 24576 }
   0x8   :  { %p1329_p0 = scmp.ne.s32.totalorder %s1771_s1, %s1328_s25  ;;  %p1332_p1 = scmp.lt.u32.totalorder %s1328_s25, %s1771_s1 }
   0xa   :  { %p1334_p2 = pnand %p1332_p1, %p1329_p0 }
   0xc   :  { %1337 = shalt.err (!%p1334_p2)
}
   0xd   :  { %s1338_s29 = scalar_lea.vmem %s39_s20, 24576  ;;  %p1343_p4 = scmp.lt.s32.totalorder %s39_s20, %s39_s20 }
   0xe   :  { %p1339_p3 = scmp.ne.s32.totalorder %s39_s20, %s1338_s29  ;;  %p1344_p5 = scmp.lt.s32.totalorder %s1338_s29, %s1338_s29 }
  0x10   :  { %p1345_p6 = por %p1344_p5, %p1343_p4 }
  0x12   :  { %p1346_p7 = pnand %p1345_p6, %p1339_p3 }
  0x14   :  { %1349 = shalt.err (!%p1346_p7)
}
  0x15   :  { %s1424_s30 = smov 256   ;;  %s1425_s12 = smov 16  }
  0x16   :  { %44 = dma.hbm_to_vmem [thread:$0]  %s1771_s1, 24576, %s39_s20, [#allocation7], %s1424_s30, %s1424_s30, %s1425_s12  }
  0x17   :  { %s1350_s17 = scalar_lea.hbm %s1770_s0, 512 }
  0x18   :  { %p1351_p8 = scmp.ne.s32.totalorder %s1770_s0, %s1350_s17  ;;  %p1354_p9 = scmp.lt.u32.totalorder %s1350_s17, %s1770_s0 }
  0x1a   :  { %p1356_p10 = pnand %p1354_p9, %p1351_p8 }
  0x1c   :  { %1359 = shalt.err (!%p1356_p10)
}
  0x1d   :  { %s1360_s24 = scalar_lea.vmem %s1492_s22, 512  ;;  %p1365_p12 = scmp.lt.s32.totalorder %s1492_s22, %s1492_s22 }
  0x1e   :  { %p1361_p11 = scmp.ne.s32.totalorder %s1492_s22, %s1360_s24  ;;  %p1366_p13 = scmp.lt.s32.totalorder %s1360_s24, %s1360_s24 }
  0x20   :  { %p1367_p0 = por %p1366_p13, %p1365_p12 }
  0x22   :  { %p1368_p1 = pnand %p1367_p0, %p1361_p11 }
  0x24   :  { %1371 = shalt.err (!%p1368_p1)
}
  0x25   :  { %32 = dma.hbm_to_vmem [thread:$0]  %s1770_s0, 512, %s1492_s22, [#allocation4], %s1424_s30, %s1424_s30, %s1425_s12  }
  0x26   :  { %s1426_s25 = smov [#allocation8]   ;;  %s1372_s28 = scalar_lea.hbm %s1775_s5, 24576 }
  0x27   :  { %s56_s26 = sshll.u32 %s1426_s25, 4  ;;  %p1373_p2 = scmp.ne.s32.totalorder %s1775_s5, %s1372_s28  ;;  %s57_s26 = int_to_ptr.vmem [resolvable:$true] %s56_s26 }
  0x28   :  { %p1376_p3 = scmp.lt.u32.totalorder %s1372_s28, %s1775_s5 }
  0x2a   :  { %p1378_p4 = pnand %p1376_p3, %p1373_p2 }
  0x2c   :  { %1381 = shalt.err (!%p1378_p4)
}
  0x2d   :  { %s1382_s16 = scalar_lea.vmem %s57_s26, 24576  ;;  %p1387_p6 = scmp.lt.s32.totalorder %s57_s26, %s57_s26 }
  0x2e   :  { %p1383_p5 = scmp.ne.s32.totalorder %s57_s26, %s1382_s16  ;;  %p1388_p7 = scmp.lt.s32.totalorder %s1382_s16, %s1382_s16 }
  0x30   :  { %p1389_p8 = por %p1388_p7, %p1387_p6 }
  0x32   :  { %p1390_p9 = pnand %p1389_p8, %p1383_p5 }
  0x34   :  { %1393 = shalt.err (!%p1390_p9)
}
  0x35   :  { %62 = dma.hbm_to_vmem [thread:$0]  %s1775_s5, 24576, %s57_s26, [#allocation7], %s1424_s30, %s1424_s30, %s1425_s12  }
  0x36   :  { %1416 = dma.done.wait [#allocation4], 512  }
  0x37   :  { %1417 = vsyncadd [#allocation4], 4294966784 }
  0x38   :  { %1418 = dma.done.wait [#allocation7], 49152  }
  0x39   :  { %1419 = vsyncadd [#allocation7], 4294918144  ;;  %v251_v1 = vld [vmem:[#allocation6 + $0x208] sm:$0xff]  ;;  %v253_v2 = vld [vmem:[#allocation6 + $0x218] sm:$0xff]  ;;  %vm1250_vm8 = vcmask 1041409   ;;  %vm1253_vm9 = vcmask 58368  }
  0x3a   :  { %v250_v3 = vld [vmem:[#allocation6 + $0x200] sm:$0xff]  ;;  %v317_v4 = vpack.c.bf16 %v253_v2, %v251_v1  ;;  %v252_v5 = vld [vmem:[#allocation6 + $0x210] sm:$0xff]  ;;  %v255_v6 = vld [vmem:[#allocation6 + $0x228] sm:$0xff] }
  0x3b   :  { %v257_v7 = vld [vmem:[#allocation6 + $0x238] sm:$0xff]  ;;  %v316_v8 = vpack.c.bf16 %v252_v5, %v250_v3  ;;  %v254_v10 = vld [vmem:[#allocation6 + $0x220] sm:$0xff]  ;;  %v256_v11 = vld [vmem:[#allocation6 + $0x230] sm:$0xff] }
  0x3c   :  { %v319_v9 = vpack.c.bf16 %v257_v7, %v255_v6  ;;  %v259_v12 = vld [vmem:[#allocation6 + $0x248] sm:$0xff]  ;;  %348 = vmatprep.subr.bf16.mxu0 %v317_v4  ;;  %v261_v13 = vld [vmem:[#allocation6 + $0x258] sm:$0xff]  ;;  %v318_v14 = vpack.c.bf16 %v256_v11, %v254_v10  ;;  %v258_v16 = vld [vmem:[#allocation6 + $0x240] sm:$0xff] }
  0x3d   :  { %349 = vmatpush1.bf16.msra.mxu0 %v316_v8  ;;  %v321_v15 = vpack.c.bf16 %v261_v13, %v259_v12  ;;  %v260_v17 = vld [vmem:[#allocation6 + $0x250] sm:$0xff]  ;;  %v263_v18 = vld [vmem:[#allocation6 + $0x268] sm:$0xff]  ;;  %v265_v19 = vld [vmem:[#allocation6 + $0x278] sm:$0xff] }
  0x3e   :  { %350 = vmatprep.subr.bf16.mxu0 %v319_v9  ;;  %v320_v20 = vpack.c.bf16 %v260_v17, %v258_v16  ;;  %v323_v21 = vpack.c.bf16 %v265_v19, %v263_v18  ;;  %v262_v22 = vld [vmem:[#allocation6 + $0x260] sm:$0xff]  ;;  %v264_v23 = vld [vmem:[#allocation6 + $0x270] sm:$0xff]  ;;  %v267_v24 = vld [vmem:[#allocation6 + $0x288] sm:$0xff] }
  0x3f   :  { %v269_v25 = vld [vmem:[#allocation6 + $0x298] sm:$0xff]  ;;  %v322_v26 = vpack.c.bf16 %v264_v23, %v262_v22  ;;  %v266_v28 = vld [vmem:[#allocation6 + $0x280] sm:$0xff]  ;;  %v268_v29 = vld [vmem:[#allocation6 + $0x290] sm:$0xff] }
  0x40   :  { %v325_v27 = vpack.c.bf16 %v269_v25, %v267_v24  ;;  %v271_v30 = vld [vmem:[#allocation6 + $0x2a8] sm:$0xff]  ;;  %v273_v31 = vld [vmem:[#allocation6 + $0x2b8] sm:$0xff]  ;;  %v324_v32 = vpack.c.bf16 %v268_v29, %v266_v28  ;;  %v270_v34 = vld [vmem:[#allocation6 + $0x2a0] sm:$0xff] }
  0x41   :  { %351 = vmatpush1.bf16.msra.mxu0 %v318_v14  ;;  %v327_v33 = vpack.c.bf16 %v273_v31, %v271_v30  ;;  %v272_v35 = vld [vmem:[#allocation6 + $0x2b0] sm:$0xff]  ;;  %v275_v36 = vld [vmem:[#allocation6 + $0x2c8] sm:$0xff]  ;;  %v277_v37 = vld [vmem:[#allocation6 + $0x2d8] sm:$0xff]  ;;  %v86_v14 = vlaneseq }
  0x42   :  { %352 = vmatprep.subr.bf16.mxu0 %v321_v15  ;;  %v326_v38 = vpack.c.bf16 %v272_v35, %v270_v34  ;;  %v274_v39 = vld [vmem:[#allocation6 + $0x2c0] sm:$0xff]  ;;  %v329_v40 = vpack.c.bf16 %v277_v37, %v275_v36  ;;  %v276_v41 = vld [vmem:[#allocation6 + $0x2d0] sm:$0xff]  ;;  %v1544_v42 = vld [vmem:[#allocation3 + $0x8] sm:$0xff] }
  0x43   :  { %v1546_v43 = vld [vmem:[#allocation3 + $0x18] sm:$0xff]  ;;  %v279_v44 = vld [vmem:[#allocation6 + $0x2e8] sm:$0xff]  ;;  %v328_v47 = vpack.c.bf16 %v276_v41, %v274_v39  ;;  %v278_v49 = vld [vmem:[#allocation6 + $0x2e0] sm:$0xff] }
  0x44   :  { %v281_v45 = vld [vmem:[#allocation6 + $0x2f8] sm:$0xff]  ;;  %v315_v46 = vpack.c.bf16 %v1546_v43, %v1544_v42  ;;  %v280_v50 = vld [vmem:[#allocation6 + $0x2f0] sm:$0xff]  ;;  %v283_v51 = vld [vmem:[#allocation6 + $0x308] sm:$0xff]  ;;  %v120_v41 = vrot.slane %v1546_v43, 7 }
  0x45   :  { %353 = vmatpush1.bf16.msra.mxu0 %v320_v20  ;;  %v331_v48 = vpack.c.bf16 %v281_v45, %v279_v44  ;;  %v285_v52 = vld [vmem:[#allocation6 + $0x318] sm:$0xff]  ;;  %v330_v53 = vpack.c.bf16 %v280_v50, %v278_v49  ;;  %v282_v55 = vld [vmem:[#allocation6 + $0x300] sm:$0xff]  ;;  %v284_v56 = vld [vmem:[#allocation6 + $0x310] sm:$0xff] }
  0x46   :  { %354 = vmatprep.subr.bf16.mxu0 %v323_v21  ;;  %380 = vmatprep.mubr.bf16.mxu0 %v315_v46  ;;  %v333_v54 = vpack.c.bf16 %v285_v52, %v283_v51  ;;  %v287_v57 = vld [vmem:[#allocation6 + $0x328] sm:$0xff]  ;;  %v289_v58 = vld [vmem:[#allocation6 + $0x338] sm:$0xff]  ;;  %v332_v59 = vpack.c.bf16 %v284_v56, %v282_v55  ;;  %v286_v61 = vld [vmem:[#allocation6 + $0x320] sm:$0xff]  ;;  %v1551_v21 = vshrl.u32 %v86_v14, 7  ;;  %v135_v46 = vrot.slane %v1544_v42, 1 }
  0x47   :  { %v335_v60 = vpack.c.bf16 %v289_v58, %v287_v57  ;;  %v288_v62 = vld [vmem:[#allocation6 + $0x330] sm:$0xff]  ;;  %v291_v63 = vld [vmem:[#allocation6 + $0x348] sm:$0xff]  ;;  %v293_v0 = vld [vmem:[#allocation6 + $0x358] sm:$0xff] }
  0x48   :  { %v334_v1 = vpack.c.bf16 %v288_v62, %v286_v61  ;;  %v337_v2 = vpack.c.bf16 %v293_v0, %v291_v63  ;;  %v290_v3 = vld [vmem:[#allocation6 + $0x340] sm:$0xff]  ;;  %v292_v4 = vld [vmem:[#allocation6 + $0x350] sm:$0xff]  ;;  %v295_v5 = vld [vmem:[#allocation6 + $0x368] sm:$0xff]  ;;  %v88_v28 = vadd.s32 8, %v1551_v21  ;;  %v93_v36 = vand.u32 7, %v1551_v21 }
  0x49   :  { %355 = vmatpush1.bf16.msra.mxu0 %v322_v26  ;;  %v297_v6 = vld [vmem:[#allocation6 + $0x378] sm:$0xff]  ;;  %v336_v7 = vpack.c.bf16 %v292_v4, %v290_v3  ;;  %v294_v9 = vld [vmem:[#allocation6 + $0x360] sm:$0xff]  ;;  %v296_v10 = vld [vmem:[#allocation6 + $0x370] sm:$0xff]  ;;  %vm121_vm0 = vcmp.lt.s32.totalorder %v1551_v21, 1  ;;  %vm138_vm3 = vcmp.lt.s32.totalorder %v1551_v21, 7 }
  0x4a   :  { %356 = vmatprep.subr.bf16.mxu0 %v325_v27  ;;  %v339_v8 = vpack.c.bf16 %v297_v6, %v295_v5  ;;  %v299_v11 = vld [vmem:[#allocation6 + $0x388] sm:$0xff]  ;;  %v301_v12 = vld [vmem:[#allocation6 + $0x398] sm:$0xff]  ;;  %v338_v13 = vpack.c.bf16 %v296_v10, %v294_v9  ;;  %v298_v16 = vld [vmem:[#allocation6 + $0x380] sm:$0xff]  ;;  %v100_v37 = vand.u32 7, %v88_v28  ;;  %vm1564_vm1 = vcmp.ne.s32.totalorder %v93_v36, 0 }
  0x4b   :  { %v341_v15 = vpack.c.bf16 %v301_v12, %v299_v11  ;;  %v300_v17 = vld [vmem:[#allocation6 + $0x390] sm:$0xff]  ;;  %v303_v18 = vld [vmem:[#allocation6 + $0x3a8] sm:$0xff]  ;;  %v305_v19 = vld [vmem:[#allocation6 + $0x3b8] sm:$0xff]  ;;  %vm115_vm5 = vcmp.ne.s32.totalorder %v93_v36, 7 }
  0x4c   :  { %v340_v20 = vpack.c.bf16 %v300_v17, %v298_v16  ;;  %v343_v22 = vpack.c.bf16 %v305_v19, %v303_v18  ;;  %v302_v23 = vld [vmem:[#allocation6 + $0x3a0] sm:$0xff]  ;;  %v304_v24 = vld [vmem:[#allocation6 + $0x3b0] sm:$0xff]  ;;  %v307_v25 = vld [vmem:[#allocation6 + $0x3c8] sm:$0xff]  ;;  %vm114_vm2 = vcmp.ne.s32.totalorder %v100_v37, 0  ;;  %vm116_vm6 = vcmp.ne.s32.totalorder %v100_v37, 7 }
  0x4d   :  { %357 = vmatpush1.bf16.msra.mxu0 %v324_v32  ;;  %v309_v26 = vld [vmem:[#allocation6 + $0x3d8] sm:$0xff]  ;;  %v342_v27 = vpack.c.bf16 %v304_v24, %v302_v23  ;;  %v306_v30 = vld [vmem:[#allocation6 + $0x3c0] sm:$0xff]  ;;  %v308_v31 = vld [vmem:[#allocation6 + $0x3d0] sm:$0xff] }
  0x4e   :  { %358 = vmatprep.subr.bf16.mxu0 %v327_v33  ;;  %v345_v29 = vpack.c.bf16 %v309_v26, %v307_v25  ;;  %v311_v32 = vld [vmem:[#allocation6 + $0x3e8] sm:$0xff]  ;;  %v313_v33 = vld [vmem:[#allocation6 + $0x3f8] sm:$0xff]  ;;  %v344_v34 = vpack.c.bf16 %v308_v31, %v306_v30  ;;  %v310_v35 = vld [vmem:[#allocation6 + $0x3e0] sm:$0xff] }
  0x4f   :  { %v312_v39 = vld [vmem:[#allocation6 + $0x3f0] sm:$0xff]  ;;  %v152_v44 = vld [vmem:[#allocation6 + $0x8] sm:$0xff]  ;;  %v154_v45 = vld [vmem:[#allocation6 + $0x18] sm:$0xff] }
  0x50   :  { %v346_v49 = vpack.c.bf16 %v312_v39, %v310_v35  ;;  %v218_v50 = vpack.c.bf16 %v154_v45, %v152_v44  ;;  %v1562_v51 = vld [vmem:[#allocation3 + $0x10] sm:$0xff]  ;;  %v151_v52 = vld [vmem:[#allocation6] sm:$0xff]  ;;  %v156_v57 = vld [vmem:[#allocation6 + $0x28] sm:$0xff] }
  0x51   :  { %359 = vmatpush1.bf16.msra.mxu0 %v326_v38  ;;  %v347_v38 = vpack.c.bf16 %v313_v33, %v311_v32  ;;  %v158_v58 = vld [vmem:[#allocation6 + $0x38] sm:$0xff]  ;;  %vm1587_vm4 = vmpackc.low %vm114_vm2, %vm1564_vm1  ;;  %v155_v3 = vld [vmem:[#allocation6 + $0x20] sm:$0xff] }
  0x52   :  { %360 = vmatprep.subr.bf16.mxu0 %v329_v40  ;;  %v118_v40 = vrot.slane %v1544_v42, 7  ;;  %v136_v42 = vrot.slane %v1562_v51, 1  ;;  %v157_v4 = vld [vmem:[#allocation6 + $0x30] sm:$0xff]  ;;  %vm1593_vm7 = vmpackc.low %vm116_vm6, %vm115_vm5  ;;  %v162_v9 = vld [vmem:[#allocation6 + $0x58] sm:$0xff] }
  0x53   :  { %v219_v11 = vpack.c.bf16 %v157_v4, %v155_v3  ;;  %v164_v16 = vld [vmem:[#allocation6 + $0x68] sm:$0xff]  ;;  %v166_v17 = vld [vmem:[#allocation6 + $0x78] sm:$0xff]  ;;  %v169_v28 = vld [vmem:[#allocation6 + $0x90] sm:$0xff] }
  0x54   :  { %v125_v56 = vsel %vm121_vm0, %v120_v41, %v118_v40  ;;  %v224_v19 = vpack.c.bf16 %v166_v17, %v164_v16  ;;  %v168_v23 = vld [vmem:[#allocation6 + $0x88] sm:$0xff]  ;;  %v170_v24 = vld [vmem:[#allocation6 + $0x98] sm:$0xff]  ;;  %v171_v33 = vld [vmem:[#allocation6 + $0xa0] sm:$0xff] }
  0x55   :  { %361 = vmatpush1.bf16.msra.mxu0 %v328_v47  ;;  %v137_v47 = vrot.slane %v1546_v43, 1  ;;  %v123_v43 = vsel %vm121_vm0, %v118_v40, %v120_v41  ;;  %v226_v26 = vpack.c.bf16 %v170_v24, %v168_v23  ;;  %v174_v30 = vld [vmem:[#allocation6 + $0xb8] sm:$0xff]  ;;  %v176_v35 = vld [vmem:[#allocation6 + $0xc8] sm:$0xff]  ;;  %v175_v39 = vld [vmem:[#allocation6 + $0xc0] sm:$0xff] }
  0x56   :  { %362 = vmatprep.subr.bf16.mxu0 %v331_v48  ;;  %v1560_v48 = vld [vmem:[#allocation3] sm:$0xff]  ;;  %v1272_v0 = vpack.c.bf16 %v123_v43, %v125_v56  ;;  %v178_v36 = vld [vmem:[#allocation6 + $0xd8] sm:$0xff]  ;;  %v177_v40 = vld [vmem:[#allocation6 + $0xd0] sm:$0xff] }
  0x57   :  { %v134_v55 = vrot.slane %v1560_v48, 1  ;;  %v1579_v61 = vsel %vm138_vm3, %v135_v46, %v137_v47  ;;  %v1583_v62 = vsel %vm138_vm3, %v137_v47, %v135_v46  ;;  %v180_v41 = vld [vmem:[#allocation6 + $0xe8] sm:$0xff]  ;;  %v182_v44 = vld [vmem:[#allocation6 + $0xf8] sm:$0xff]  ;;  %v229_v45 = vpack.c.bf16 %v177_v40, %v175_v39  ;;  %v179_v47 = vld [vmem:[#allocation6 + $0xe0] sm:$0xff] }
  0x58   :  { %v232_v46 = vpack.c.bf16 %v182_v44, %v180_v41  ;;  %v188_v43 = vld [vmem:[#allocation6 + $0x128] sm:$0xff]  ;;  %v190_v56 = vld [vmem:[#allocation6 + $0x138] sm:$0xff]  ;;  %v195_v16 = vld [vmem:[#allocation6 + $0x160] sm:$0xff]  ;;  %v117_v39 = vrot.slane %v1560_v48, 7  ;;  %v119_v40 = vrot.slane %v1562_v51, 7 }
  0x59   :  { %363 = vmatpush1.bf16.msra.mxu0 %v330_v53  ;;  %v153_v53 = vld [vmem:[#allocation6 + $0x10] sm:$0xff]  ;;  %v1599_v6 = vsel %vm138_vm3, %v134_v55, %v136_v42  ;;  %v199_v23 = vld [vmem:[#allocation6 + $0x180] sm:$0xff] }
  0x5a   :  { %364 = vmatprep.subr.bf16.mxu0 %v333_v54  ;;  %v197_v17 = vld [vmem:[#allocation6 + $0x170] sm:$0xff]  ;;  %v985_v63 = vld [vmem:[#allocation8 + $0x460] sm:$0xff] }
  0x5b   :  { %v201_v24 = vld [vmem:[#allocation6 + $0x190] sm:$0xff] }
  0x5d   :  { %365 = vmatpush1.bf16.msra.mxu0 %v332_v59  ;;  %v314_v59 = vpack.c.bf16 %v1562_v51, %v1560_v48  ;;  %v437_v51 = vld [vmem:[#allocation6 + $0x410] sm:$0xff] }
  0x5e   :  { %366 = vmatprep.subr.bf16.mxu0 %v335_v60  ;;  %v217_v60 = vpack.c.bf16 %v153_v53, %v151_v52  ;;  %v186_v52 = vld [vmem:[#allocation6 + $0x118] sm:$0xff] }
  0x61   :  { %367 = vmatpush1.bf16.msra.mxu0 %v334_v1  ;;  %v1278_v1 = vpack.c.bf16 %v1583_v62, %v1579_v61  ;;  %v451_v62 = vld [vmem:[#allocation6 + $0x480] sm:$0xff] }
  0x62   :  { %368 = vmatprep.subr.bf16.mxu0 %v337_v2  ;;  %v220_v2 = vpack.c.bf16 %v158_v58, %v156_v57  ;;  %v236_v58 = vpack.c.bf16 %v190_v56, %v188_v43 }
  0x65   :  { %369 = vmatpush1.bf16.msra.mxu0 %v336_v7  ;;  %v1603_v7 = vsel %vm138_vm3, %v136_v42, %v134_v55  ;;  %v183_v55 = vld [vmem:[#allocation6 + $0x100] sm:$0xff]  ;;  %v185_v42 = vld [vmem:[#allocation6 + $0x110] sm:$0xff] }
  0x66   :  { %370 = vmatprep.subr.bf16.mxu0 %v339_v8  ;;  %v160_v8 = vld [vmem:[#allocation6 + $0x48] sm:$0xff]  ;;  %v1281_v10 = vpack.c.bf16 %v1603_v7, %v1599_v6  ;;  %v233_v57 = vpack.c.bf16 %v185_v42, %v183_v55  ;;  %v442_v42 = vld [vmem:[#allocation6 + $0x438] sm:$0xff] }
  0x67   :  { %v222_v12 = vpack.c.bf16 %v162_v9, %v160_v8  ;;  %v191_v8 = vld [vmem:[#allocation6 + $0x140] sm:$0xff]  ;;  %v193_v9 = vld [vmem:[#allocation6 + $0x150] sm:$0xff]  ;;  %v440_v55 = vld [vmem:[#allocation6 + $0x428] sm:$0xff] }
  0x69   :  { %371 = vmatpush1.bf16.msra.mxu0 %v338_v13  ;;  %v159_v13 = vld [vmem:[#allocation6 + $0x40] sm:$0xff] }
  0x6a   :  { %372 = vmatprep.subr.bf16.mxu0 %v341_v15  ;;  %v161_v15 = vld [vmem:[#allocation6 + $0x50] sm:$0xff] }
  0x6b   :  { %v221_v18 = vpack.c.bf16 %v161_v15, %v159_v13  ;;  %v237_v13 = vpack.c.bf16 %v193_v9, %v191_v8  ;;  %v445_v8 = vld [vmem:[#allocation6 + $0x450] sm:$0xff]  ;;  %v448_v9 = vld [vmem:[#allocation6 + $0x468] sm:$0xff] }
  0x6d   :  { %373 = vmatpush1.bf16.msra.mxu0 %v340_v20  ;;  %v163_v20 = vld [vmem:[#allocation6 + $0x60] sm:$0xff] }
  0x6e   :  { %374 = vmatprep.subr.bf16.mxu0 %v343_v22  ;;  %v165_v22 = vld [vmem:[#allocation6 + $0x70] sm:$0xff] }
  0x6f   :  { %v223_v25 = vpack.c.bf16 %v165_v22, %v163_v20  ;;  %v239_v20 = vpack.c.bf16 %v197_v17, %v195_v16  ;;  %v449_v16 = vld [vmem:[#allocation6 + $0x470] sm:$0xff]  ;;  %v452_v17 = vld [vmem:[#allocation6 + $0x488] sm:$0xff] }
  0x71   :  { %375 = vmatpush1.bf16.msra.mxu0 %v342_v27  ;;  %v167_v27 = vld [vmem:[#allocation6 + $0x80] sm:$0xff] }
  0x72   :  { %376 = vmatprep.subr.bf16.mxu0 %v345_v29  ;;  %v172_v29 = vld [vmem:[#allocation6 + $0xa8] sm:$0xff]  ;;  %v225_v31 = vpack.c.bf16 %v169_v28, %v167_v27  ;;  %v241_v27 = vpack.c.bf16 %v201_v24, %v199_v23 }
  0x73   :  { %v228_v32 = vpack.c.bf16 %v174_v30, %v172_v29  ;;  %v203_v29 = vld [vmem:[#allocation6 + $0x1a0] sm:$0xff]  ;;  %v205_v30 = vld [vmem:[#allocation6 + $0x1b0] sm:$0xff] }
  0x75   :  { %377 = vmatpush1.bf16.msra.mxu0 %v344_v34  ;;  %v173_v34 = vld [vmem:[#allocation6 + $0xb0] sm:$0xff] }
  0x76   :  { %378 = vmatprep.subr.bf16.mxu0 %v347_v38  ;;  %v227_v37 = vpack.c.bf16 %v173_v34, %v171_v33  ;;  %v230_v38 = vpack.c.bf16 %v178_v36, %v176_v35  ;;  %v243_v33 = vpack.c.bf16 %v205_v30, %v203_v29  ;;  %v207_v35 = vld [vmem:[#allocation6 + $0x1c0] sm:$0xff]  ;;  %v209_v36 = vld [vmem:[#allocation6 + $0x1d0] sm:$0xff] }
  0x77   :  { %v245_v41 = vpack.c.bf16 %v209_v36, %v207_v35 }
  0x79   :  { %379 = vmatpush1.bf16.msra.mxu0 %v346_v49  ;;  %v181_v49 = vld [vmem:[#allocation6 + $0xf0] sm:$0xff] }
  0x7a   :  { %391 = vmatprep.subr.bf16.mxu0 %v218_v50  ;;  %v184_v50 = vld [vmem:[#allocation6 + $0x108] sm:$0xff]  ;;  %v231_v53 = vpack.c.bf16 %v181_v49, %v179_v47  ;;  %v438_v49 = vld [vmem:[#allocation6 + $0x418] sm:$0xff] }
  0x7b   :  { %v234_v54 = vpack.c.bf16 %v186_v52, %v184_v50  ;;  %v436_v47 = vld [vmem:[#allocation6 + $0x408] sm:$0xff]  ;;  %v122_v52 = vsel %vm121_vm0, %v117_v39, %v119_v40 }
  0x7c   :  { %381 = vmatmul.mubr.bf16.vlgmr.msra.gmra.mrb[0].mxu0 %v314_v59  ;;  %v187_v59 = vld [vmem:[#allocation6 + $0x120] sm:$0xff]  ;;  %v502_v48 = vpack.c.bf16 %v438_v49, %v436_v47  ;;  %v472_v47 = vld [vmem:[#allocation6 + $0x528] sm:$0xff]  ;;  %v474_v49 = vld [vmem:[#allocation6 + $0x538] sm:$0xff] }
  0x7d   :  { %392 = vmatpush1.bf16.msra.mxu0 %v217_v60  ;;  %1273 = vmatprep.mubr.msk.bf16.mxu0 %vm1587_vm4, %v1272_v0  ;;  %v189_v60 = vld [vmem:[#allocation6 + $0x130] sm:$0xff]  ;;  %v192_v0 = vld [vmem:[#allocation6 + $0x148] sm:$0xff] }
  0x7e   :  { %393 = vmatprep.subr.bf16.mxu0 %v220_v2  ;;  %v194_v2 = vld [vmem:[#allocation6 + $0x158] sm:$0xff]  ;;  %v235_v3 = vpack.c.bf16 %v189_v60, %v187_v59  ;;  %v441_v59 = vld [vmem:[#allocation6 + $0x430] sm:$0xff]  ;;  %v444_v60 = vld [vmem:[#allocation6 + $0x448] sm:$0xff] }
  0x7f   :  { %v238_v4 = vpack.c.bf16 %v194_v2, %v192_v0  ;;  %v446_v0 = vld [vmem:[#allocation6 + $0x458] sm:$0xff] }
  0x81   :  { %394 = vmatpush1.bf16.msra.mxu0 %v219_v11  ;;  %v196_v11 = vld [vmem:[#allocation6 + $0x168] sm:$0xff] }
  0x82   :  { %395 = vmatprep.subr.bf16.mxu0 %v222_v12  ;;  %v198_v12 = vld [vmem:[#allocation6 + $0x178] sm:$0xff] }
  0x83   :  { %v240_v15 = vpack.c.bf16 %v198_v12, %v196_v11  ;;  %v450_v11 = vld [vmem:[#allocation6 + $0x478] sm:$0xff] }
  0x85   :  { %396 = vmatpush1.bf16.msra.mxu0 %v221_v18  ;;  %v200_v18 = vld [vmem:[#allocation6 + $0x188] sm:$0xff] }
  0x86   :  { %397 = vmatprep.subr.bf16.mxu0 %v224_v19  ;;  %v202_v19 = vld [vmem:[#allocation6 + $0x198] sm:$0xff] }
  0x87   :  { %v242_v22 = vpack.c.bf16 %v202_v19, %v200_v18  ;;  %v454_v18 = vld [vmem:[#allocation6 + $0x498] sm:$0xff] }
  0x88   :  { %v510_v61 = vpack.c.bf16 %v454_v18, %v452_v17  ;;  %v487_v18 = vld [vmem:[#allocation6 + $0x5a0] sm:$0xff] }
  0x89   :  { %398 = vmatpush1.bf16.msra.mxu0 %v223_v25  ;;  %v204_v25 = vld [vmem:[#allocation6 + $0x1a8] sm:$0xff] }
  0x8a   :  { %399 = vmatprep.subr.bf16.mxu0 %v226_v26  ;;  %v206_v26 = vld [vmem:[#allocation6 + $0x1b8] sm:$0xff] }
  0x8b   :  { %v244_v28 = vpack.c.bf16 %v206_v26, %v204_v25  ;;  %v455_v25 = vld [vmem:[#allocation6 + $0x4a0] sm:$0xff]  ;;  %v457_v26 = vld [vmem:[#allocation6 + $0x4b0] sm:$0xff] }
  0x8c   :  { %v511_v29 = vpack.c.bf16 %v457_v26, %v455_v25  ;;  %v498_v25 = vld [vmem:[#allocation6 + $0x5f8] sm:$0xff] }
  0x8d   :  { %400 = vmatpush1.bf16.msra.mxu0 %v225_v31  ;;  %v208_v31 = vld [vmem:[#allocation6 + $0x1c8] sm:$0xff] }
  0x8e   :  { %401 = vmatprep.subr.bf16.mxu0 %v228_v32  ;;  %v210_v32 = vld [vmem:[#allocation6 + $0x1d8] sm:$0xff] }
  0x8f   :  { %v246_v34 = vpack.c.bf16 %v210_v32, %v208_v31  ;;  %v459_v31 = vld [vmem:[#allocation6 + $0x4c0] sm:$0xff]  ;;  %v461_v32 = vld [vmem:[#allocation6 + $0x4d0] sm:$0xff] }
  0x90   :  { %v513_v35 = vpack.c.bf16 %v461_v32, %v459_v31  ;;  %v1628_v31 = vsub.s32 0, %v1551_v21  ;;  %v580_v32 = vld [vmem:[%s1772_s2] sm:$0x3] }
  0x91   :  { %402 = vmatpush1.bf16.msra.mxu0 %v227_v37  ;;  %v212_v37 = vld [vmem:[#allocation6 + $0x1e8] sm:$0xff] }
  0x92   :  { %403 = vmatprep.subr.bf16.mxu0 %v230_v38  ;;  %v214_v38 = vld [vmem:[#allocation6 + $0x1f8] sm:$0xff] }
  0x93   :  { %v248_v44 = vpack.c.bf16 %v214_v38, %v212_v37  ;;  %v463_v37 = vld [vmem:[#allocation6 + $0x4e0] sm:$0xff]  ;;  %v465_v38 = vld [vmem:[#allocation6 + $0x4f0] sm:$0xff] }
  0x95   :  { %404 = vmatpush1.bf16.msra.mxu0 %v229_v45  ;;  %v211_v45 = vld [vmem:[#allocation6 + $0x1e0] sm:$0xff] }
  0x96   :  { %405 = vmatprep.subr.bf16.mxu0 %v232_v46  ;;  %v213_v46 = vld [vmem:[#allocation6 + $0x1f0] sm:$0xff] }
  0x97   :  { %v247_v50 = vpack.c.bf16 %v213_v46, %v211_v45  ;;  %v467_v45 = vld [vmem:[#allocation6 + $0x500] sm:$0xff]  ;;  %v469_v46 = vld [vmem:[#allocation6 + $0x510] sm:$0xff] }
  0x99   :  { %406 = vmatpush1.bf16.msra.mxu0 %v231_v53  ;;  %v124_v53 = vsel %vm121_vm0, %v119_v40, %v117_v39  ;;  %v468_v39 = vld [vmem:[#allocation6 + $0x508] sm:$0xff]  ;;  %v470_v40 = vld [vmem:[#allocation6 + $0x518] sm:$0xff] }
  0x9a   :  { %407 = vmatprep.subr.bf16.mxu0 %v234_v54  ;;  %v435_v54 = vld [vmem:[#allocation6 + $0x400] sm:$0xff]  ;;  %v1275_v43 = vpack.c.bf16 %v122_v52, %v124_v53  ;;  %v520_v52 = vpack.c.bf16 %v474_v49, %v472_v47 }
  0x9b   :  { %v501_v56 = vpack.c.bf16 %v437_v51, %v435_v54  ;;  %v471_v53 = vld [vmem:[#allocation6 + $0x520] sm:$0xff]  ;;  %v476_v54 = vld [vmem:[#allocation6 + $0x548] sm:$0xff]  ;;  %v478_v51 = vld [vmem:[#allocation6 + $0x558] sm:$0xff] }
  0x9c   :  { %v788_v47 = vld [vmem:[#allocation8 + $0x200] sm:$0xff] }
  0x9d   :  { %408 = vmatpush1.bf16.msra.mxu0 %v233_v57  ;;  %v504_v57 = vpack.c.bf16 %v442_v42, %v440_v55  ;;  %v522_v42 = vpack.c.bf16 %v478_v51, %v476_v54  ;;  %v792_v51 = vld [vmem:[#allocation8 + $0x220] sm:$0xff] }
  0x9e   :  { %409 = vmatprep.subr.bf16.mxu0 %v236_v58  ;;  %v439_v58 = vld [vmem:[#allocation6 + $0x420] sm:$0xff] }
  0x9f   :  { %v503_v2 = vpack.c.bf16 %v441_v59, %v439_v58  ;;  %v482_v58 = vld [vmem:[#allocation6 + $0x578] sm:$0xff] }
  0xa1   :  { %410 = vmatpush1.bf16.msra.mxu0 %v235_v3  ;;  %v506_v3 = vpack.c.bf16 %v446_v0, %v444_v60  ;;  %v479_v0 = vld [vmem:[#allocation6 + $0x560] sm:$0xff] }
  0xa2   :  { %411 = vmatprep.subr.bf16.mxu0 %v238_v4  ;;  %v443_v4 = vld [vmem:[#allocation6 + $0x440] sm:$0xff] }
  0xa3   :  { %v505_v12 = vpack.c.bf16 %v445_v8, %v443_v4  ;;  %v486_v4 = vld [vmem:[#allocation6 + $0x598] sm:$0xff] }
  0xa5   :  { %412 = vmatpush1.bf16.msra.mxu0 %v237_v13  ;;  %v508_v13 = vpack.c.bf16 %v450_v11, %v448_v9  ;;  %v483_v11 = vld [vmem:[#allocation6 + $0x580] sm:$0xff] }
  0xa6   :  { %413 = vmatprep.subr.bf16.mxu0 %v240_v15  ;;  %v447_v15 = vld [vmem:[#allocation6 + $0x460] sm:$0xff] }
  0xa7   :  { %v507_v19 = vpack.c.bf16 %v449_v16, %v447_v15  ;;  %v490_v15 = vld [vmem:[#allocation6 + $0x5b8] sm:$0xff] }
  0xa9   :  { %414 = vmatpush1.bf16.msra.mxu0 %v239_v20  ;;  %v456_v20 = vld [vmem:[#allocation6 + $0x4a8] sm:$0xff] }
  0xaa   :  { %415 = vmatprep.subr.bf16.mxu0 %v242_v22  ;;  %v458_v22 = vld [vmem:[#allocation6 + $0x4b8] sm:$0xff] }
  0xab   :  { %v512_v24 = vpack.c.bf16 %v458_v22, %v456_v20  ;;  %v491_v22 = vld [vmem:[#allocation6 + $0x5c0] sm:$0xff] }
  0xad   :  { %416 = vmatpush1.bf16.msra.mxu0 %v241_v27  ;;  %v460_v27 = vld [vmem:[#allocation6 + $0x4c8] sm:$0xff] }
  0xae   :  { %417 = vmatprep.subr.bf16.mxu0 %v244_v28  ;;  %v462_v28 = vld [vmem:[#allocation6 + $0x4d8] sm:$0xff] }
  0xaf   :  { %v514_v30 = vpack.c.bf16 %v462_v28, %v460_v27  ;;  %v495_v28 = vld [vmem:[#allocation6 + $0x5e0] sm:$0xff] }
  0xb1   :  { %418 = vmatpush1.bf16.msra.mxu0 %v243_v33  ;;  %v464_v33 = vld [vmem:[#allocation6 + $0x4e8] sm:$0xff] }
  0xb2   :  { %419 = vmatprep.subr.bf16.mxu0 %v246_v34  ;;  %v466_v34 = vld [vmem:[#allocation6 + $0x4f8] sm:$0xff] }
  0xb3   :  { %v516_v36 = vpack.c.bf16 %v466_v34, %v464_v33  ;;  %v1634_v33 = vsub.s32 1, %v1551_v21  ;;  %v585_v34 = vrot.slane %v580_v32, %v1628_v31 }
  0xb5   :  { %420 = vmatpush1.bf16.msra.mxu0 %v245_v41  ;;  %v515_v41 = vpack.c.bf16 %v465_v38, %v463_v37 }
  0xb6   :  { %421 = vmatprep.subr.bf16.mxu0 %v248_v44  ;;  %v518_v44 = vpack.c.bf16 %v470_v40, %v468_v39 }
  0xb9   :  { %422 = vmatpush1.bf16.msra.mxu0 %v247_v50  ;;  %v517_v50 = vpack.c.bf16 %v469_v46, %v467_v45  ;;  %v789_v45 = vld [vmem:[#allocation8 + $0x208] sm:$0xff]  ;;  %v791_v46 = vld [vmem:[#allocation8 + $0x218] sm:$0xff] }
  0xba   :  { %533 = vmatprep.subr.bf16.mxu0 %v502_v48  ;;  %v473_v48 = vld [vmem:[#allocation6 + $0x530] sm:$0xff]  ;;  %v855_v49 = vpack.c.bf16 %v791_v46, %v789_v45 }
  0xbb   :  { %v519_v55 = vpack.c.bf16 %v473_v48, %v471_v53  ;;  %v795_v53 = vld [vmem:[#allocation8 + $0x238] sm:$0xff] }
  0xbc   :  { %1276 = vmatmul.mubr.msk.bf16.vlgmr.msra.gmra.mrb[0].mxu0 %vm1587_vm4, %v1275_v43  ;;  %v475_v43 = vld [vmem:[#allocation6 + $0x540] sm:$0xff]  ;;  %886 = vmatprep.subr.bf16.mxu1 %v855_v49 }
  0xbd   :  { %534 = vmatpush1.bf16.msra.mxu0 %v501_v56  ;;  %1279 = vmatprep.mubr.msk.bf16.mxu0 %vm1593_vm7, %v1278_v1  ;;  %v453_v1 = vld [vmem:[#allocation6 + $0x490] sm:$0xff] }
  0xbe   :  { %535 = vmatprep.subr.bf16.mxu0 %v504_v57  ;;  %v509_v23 = vpack.c.bf16 %v453_v1, %v451_v62  ;;  %v477_v56 = vld [vmem:[#allocation6 + $0x550] sm:$0xff]  ;;  %v480_v57 = vld [vmem:[#allocation6 + $0x568] sm:$0xff]  ;;  %v494_v62 = vld [vmem:[#allocation6 + $0x5d8] sm:$0xff] }
  0xbf   :  { %v521_v59 = vpack.c.bf16 %v477_v56, %v475_v43  ;;  %v524_v60 = vpack.c.bf16 %v482_v58, %v480_v57  ;;  %v799_v43 = vld [vmem:[#allocation8 + $0x258] sm:$0xff]  ;;  %v796_v58 = vld [vmem:[#allocation8 + $0x240] sm:$0xff] }
  0xc1   :  { %536 = vmatpush1.bf16.msra.mxu0 %v503_v2  ;;  %v481_v2 = vld [vmem:[#allocation6 + $0x570] sm:$0xff] }
  0xc2   :  { %537 = vmatprep.subr.bf16.mxu0 %v506_v3  ;;  %v484_v3 = vld [vmem:[#allocation6 + $0x588] sm:$0xff]  ;;  %v523_v8 = vpack.c.bf16 %v481_v2, %v479_v0  ;;  %v803_v0 = vld [vmem:[#allocation8 + $0x278] sm:$0xff] }
  0xc3   :  { %v526_v9 = vpack.c.bf16 %v486_v4, %v484_v3  ;;  %v800_v4 = vld [vmem:[#allocation8 + $0x260] sm:$0xff] }
  0xc5   :  { %538 = vmatpush1.bf16.msra.mxu0 %v505_v12  ;;  %v485_v12 = vld [vmem:[#allocation6 + $0x590] sm:$0xff] }
  0xc6   :  { %539 = vmatprep.subr.bf16.mxu0 %v508_v13  ;;  %v488_v13 = vld [vmem:[#allocation6 + $0x5a8] sm:$0xff]  ;;  %v525_v16 = vpack.c.bf16 %v485_v12, %v483_v11  ;;  %v807_v11 = vld [vmem:[#allocation8 + $0x298] sm:$0xff] }
  0xc7   :  { %v528_v17 = vpack.c.bf16 %v490_v15, %v488_v13  ;;  %v804_v15 = vld [vmem:[#allocation8 + $0x280] sm:$0xff] }
  0xc9   :  { %540 = vmatpush1.bf16.msra.mxu0 %v507_v19  ;;  %v489_v19 = vld [vmem:[#allocation6 + $0x5b0] sm:$0xff] }
  0xca   :  { %541 = vmatprep.subr.bf16.mxu0 %v510_v61  ;;  %v492_v61 = vld [vmem:[#allocation6 + $0x5c8] sm:$0xff]  ;;  %v527_v1 = vpack.c.bf16 %v489_v19, %v487_v18  ;;  %v811_v18 = vld [vmem:[#allocation8 + $0x2b8] sm:$0xff] }
  0xcb   :  { %v530_v20 = vpack.c.bf16 %v494_v62, %v492_v61  ;;  %v808_v62 = vld [vmem:[#allocation8 + $0x2a0] sm:$0xff] }
  0xcd   :  { %542 = vmatpush1.bf16.msra.mxu0 %v509_v23  ;;  %v493_v23 = vld [vmem:[#allocation6 + $0x5d0] sm:$0xff] }
  0xce   :  { %543 = vmatprep.subr.bf16.mxu0 %v512_v24  ;;  %v496_v24 = vld [vmem:[#allocation6 + $0x5e8] sm:$0xff]  ;;  %v529_v26 = vpack.c.bf16 %v493_v23, %v491_v22  ;;  %v815_v22 = vld [vmem:[#allocation8 + $0x2d8] sm:$0xff] }
  0xcf   :  { %v532_v27 = vpack.c.bf16 %v498_v25, %v496_v24  ;;  %v812_v25 = vld [vmem:[#allocation8 + $0x2c0] sm:$0xff] }
  0xd1   :  { %544 = vmatpush1.bf16.msra.mxu0 %v511_v29  ;;  %v497_v29 = vld [vmem:[#allocation6 + $0x5f0] sm:$0xff] }
  0xd2   :  { %545 = vmatprep.subr.bf16.mxu0 %v514_v30  ;;  %v531_v30 = vpack.c.bf16 %v497_v29, %v495_v28  ;;  %v819_v28 = vld [vmem:[#allocation8 + $0x2f8] sm:$0xff] }
  0xd5   :  { %546 = vmatpush1.bf16.msra.mxu0 %v513_v35  ;;  %v589_v35 = vrot.slane %v580_v32, %v1634_v33  ;;  %v816_v32 = vld [vmem:[#allocation8 + $0x2e0] sm:$0xff] }
  0xd6   :  { %547 = vmatprep.subr.bf16.mxu0 %v516_v36 }
  0xd9   :  { %548 = vmatpush1.bf16.msra.mxu0 %v515_v41 }
  0xda   :  { %549 = vmatprep.subr.bf16.mxu0 %v518_v44 }
  0xdd   :  { %550 = vmatpush1.bf16.msra.mxu0 %v517_v50  ;;  %v790_v50 = vld [vmem:[#allocation8 + $0x210] sm:$0xff] }
  0xde   :  { %551 = vmatprep.subr.bf16.mxu0 %v520_v52  ;;  %v793_v52 = vld [vmem:[#allocation8 + $0x228] sm:$0xff]  ;;  %v854_v48 = vpack.c.bf16 %v790_v50, %v788_v47 }
  0xdf   :  { %v857_v54 = vpack.c.bf16 %v795_v53, %v793_v52 }
  0xe0   :  { %887 = vmatpush1.bf16.msra.mxu1 %v854_v48 }
  0xe1   :  { %552 = vmatpush1.bf16.msra.mxu0 %v519_v55  ;;  %v794_v55 = vld [vmem:[#allocation8 + $0x230] sm:$0xff]  ;;  %888 = vmatprep.subr.bf16.mxu1 %v857_v54 }
  0xe2   :  { %553 = vmatprep.subr.bf16.mxu0 %v522_v42  ;;  %v797_v42 = vld [vmem:[#allocation8 + $0x248] sm:$0xff]  ;;  %v856_v56 = vpack.c.bf16 %v794_v55, %v792_v51 }
  0xe3   :  { %v859_v57 = vpack.c.bf16 %v799_v43, %v797_v42  ;;  %v825_v43 = vld [vmem:[#allocation8 + $0x328] sm:$0xff] }
  0xe4   :  { %889 = vmatpush1.bf16.msra.mxu1 %v856_v56  ;;  %v827_v56 = vld [vmem:[#allocation8 + $0x338] sm:$0xff] }
  0xe5   :  { %554 = vmatpush1.bf16.msra.mxu0 %v521_v59  ;;  %v798_v59 = vld [vmem:[#allocation8 + $0x250] sm:$0xff]  ;;  %890 = vmatprep.subr.bf16.mxu1 %v859_v57  ;;  %v873_v57 = vpack.c.bf16 %v827_v56, %v825_v43 }
  0xe6   :  { %555 = vmatprep.subr.bf16.mxu0 %v524_v60  ;;  %v801_v60 = vld [vmem:[#allocation8 + $0x268] sm:$0xff]  ;;  %v858_v2 = vpack.c.bf16 %v798_v59, %v796_v58  ;;  %v824_v58 = vld [vmem:[#allocation8 + $0x320] sm:$0xff]  ;;  %v826_v59 = vld [vmem:[#allocation8 + $0x330] sm:$0xff] }
  0xe7   :  { %v861_v3 = vpack.c.bf16 %v803_v0, %v801_v60  ;;  %v831_v60 = vld [vmem:[#allocation8 + $0x358] sm:$0xff] }
  0xe8   :  { %891 = vmatpush1.bf16.msra.mxu1 %v858_v2  ;;  %v828_v2 = vld [vmem:[#allocation8 + $0x340] sm:$0xff] }
  0xe9   :  { %556 = vmatpush1.bf16.msra.mxu0 %v523_v8  ;;  %v802_v8 = vld [vmem:[#allocation8 + $0x270] sm:$0xff]  ;;  %892 = vmatprep.subr.bf16.mxu1 %v861_v3 }
  0xea   :  { %557 = vmatprep.subr.bf16.mxu0 %v526_v9  ;;  %v805_v9 = vld [vmem:[#allocation8 + $0x288] sm:$0xff]  ;;  %v860_v12 = vpack.c.bf16 %v802_v8, %v800_v4  ;;  %v830_v3 = vld [vmem:[#allocation8 + $0x350] sm:$0xff] }
  0xeb   :  { %v863_v13 = vpack.c.bf16 %v807_v11, %v805_v9  ;;  %v874_v4 = vpack.c.bf16 %v830_v3, %v828_v2  ;;  %v833_v8 = vld [vmem:[#allocation8 + $0x368] sm:$0xff]  ;;  %v835_v9 = vld [vmem:[#allocation8 + $0x378] sm:$0xff] }
  0xec   :  { %893 = vmatpush1.bf16.msra.mxu1 %v860_v12  ;;  %v877_v11 = vpack.c.bf16 %v835_v9, %v833_v8  ;;  %v832_v12 = vld [vmem:[#allocation8 + $0x360] sm:$0xff] }
  0xed   :  { %558 = vmatpush1.bf16.msra.mxu0 %v525_v16  ;;  %v806_v16 = vld [vmem:[#allocation8 + $0x290] sm:$0xff]  ;;  %894 = vmatprep.subr.bf16.mxu1 %v863_v13 }
  0xee   :  { %559 = vmatprep.subr.bf16.mxu0 %v528_v17  ;;  %v809_v17 = vld [vmem:[#allocation8 + $0x2a8] sm:$0xff]  ;;  %v862_v19 = vpack.c.bf16 %v806_v16, %v804_v15  ;;  %v834_v13 = vld [vmem:[#allocation8 + $0x370] sm:$0xff] }
  0xef   :  { %v865_v61 = vpack.c.bf16 %v811_v18, %v809_v17  ;;  %v876_v15 = vpack.c.bf16 %v834_v13, %v832_v12  ;;  %v837_v16 = vld [vmem:[#allocation8 + $0x388] sm:$0xff]  ;;  %v839_v17 = vld [vmem:[#allocation8 + $0x398] sm:$0xff] }
  0xf0   :  { %895 = vmatpush1.bf16.msra.mxu1 %v862_v19  ;;  %v879_v18 = vpack.c.bf16 %v839_v17, %v837_v16  ;;  %v836_v19 = vld [vmem:[#allocation8 + $0x380] sm:$0xff] }
  0xf1   :  { %560 = vmatpush1.bf16.msra.mxu0 %v527_v1  ;;  %v810_v1 = vld [vmem:[#allocation8 + $0x2b0] sm:$0xff]  ;;  %896 = vmatprep.subr.bf16.mxu1 %v865_v61 }
  0xf2   :  { %561 = vmatprep.subr.bf16.mxu0 %v530_v20  ;;  %v813_v20 = vld [vmem:[#allocation8 + $0x2c8] sm:$0xff]  ;;  %v864_v23 = vpack.c.bf16 %v810_v1, %v808_v62  ;;  %v838_v61 = vld [vmem:[#allocation8 + $0x390] sm:$0xff] }
  0xf3   :  { %v867_v24 = vpack.c.bf16 %v815_v22, %v813_v20  ;;  %v878_v62 = vpack.c.bf16 %v838_v61, %v836_v19  ;;  %v841_v1 = vld [vmem:[#allocation8 + $0x3a8] sm:$0xff]  ;;  %v843_v20 = vld [vmem:[#allocation8 + $0x3b8] sm:$0xff] }
  0xf4   :  { %897 = vmatpush1.bf16.msra.mxu1 %v864_v23  ;;  %v881_v22 = vpack.c.bf16 %v843_v20, %v841_v1  ;;  %v840_v23 = vld [vmem:[#allocation8 + $0x3a0] sm:$0xff]  ;;  %v694_v19 = vld [vmem:[#allocation8 + $0x28] sm:$0xff]  ;;  %v696_v61 = vld [vmem:[#allocation8 + $0x38] sm:$0xff] }
  0xf5   :  { %562 = vmatpush1.bf16.msra.mxu0 %v529_v26  ;;  %v814_v26 = vld [vmem:[#allocation8 + $0x2d0] sm:$0xff]  ;;  %898 = vmatprep.subr.bf16.mxu1 %v867_v24 }
  0xf6   :  { %563 = vmatprep.subr.bf16.mxu0 %v532_v27  ;;  %v817_v27 = vld [vmem:[#allocation8 + $0x2e8] sm:$0xff]  ;;  %v866_v29 = vpack.c.bf16 %v814_v26, %v812_v25  ;;  %v842_v24 = vld [vmem:[#allocation8 + $0x3b0] sm:$0xff] }
  0xf7   :  { %v880_v25 = vpack.c.bf16 %v842_v24, %v840_v23  ;;  %v845_v26 = vld [vmem:[#allocation8 + $0x3c8] sm:$0xff] }
  0xf8   :  { %899 = vmatpush1.bf16.msra.mxu1 %v866_v29  ;;  %v844_v29 = vld [vmem:[#allocation8 + $0x3c0] sm:$0xff] }
  0xf9   :  { %564 = vmatpush1.bf16.msra.mxu0 %v531_v30  ;;  %v869_v30 = vpack.c.bf16 %v819_v28, %v817_v27  ;;  %v847_v27 = vld [vmem:[#allocation8 + $0x3d8] sm:$0xff] }
  0xfa   :  { %v883_v28 = vpack.c.bf16 %v847_v27, %v845_v26  ;;  %v693_v26 = vld [vmem:[#allocation8 + $0x20] sm:$0xff]  ;;  %v695_v27 = vld [vmem:[#allocation8 + $0x30] sm:$0xff] }
  0xfb   :  { %900 = vmatprep.subr.bf16.mxu1 %v869_v30  ;;  %v846_v30 = vld [vmem:[#allocation8 + $0x3d0] sm:$0xff] }
  0xfc   :  { %1282 = vmatmul.mubr.msk.bf16.vlgmr.msra.gmra.mrb[0].mxu0 %vm1593_vm7, %v1281_v10 }
 0x1cf   :  { %v567_v36 = vpop.f32.mrb[0].mxu0 }
 0x1d0   :  { %v1638_v37 = vadd.f32 %v585_v34, %v567_v36  ;;  %v569_v6 = vpop.f32.mrb[1].mxu0  ;;  %v823_v36 = vld [vmem:[#allocation8 + $0x318] sm:$0xff] }
 0x1d1   :  { %v1640_v7 = vadd.f32 %v589_v35, %v569_v6  ;;  %v571_v10 = vpop.f32.mrb[2].mxu0 }
 0x1d2   :  { %v573_v38 = vpop.f32.mrb[3].mxu0  ;;  %v1642_v39 = vadd.f32 %v585_v34, %v571_v10  ;;  %v818_v34 = vld [vmem:[#allocation8 + $0x2f0] sm:$0xff] }
 0x1d3   :  { %v1644_v40 = vadd.f32 %v589_v35, %v573_v38  ;;  %v598_v41 = vadd.f32 %v1640_v7, %v1638_v37  ;;  %v821_v35 = vld [vmem:[#allocation8 + $0x308] sm:$0xff]  ;;  %v868_v6 = vpack.c.bf16 %v818_v34, %v816_v32  ;;  %v820_v38 = vld [vmem:[#allocation8 + $0x300] sm:$0xff]  ;;  %v882_v34 = vpack.c.bf16 %v846_v30, %v844_v29 }
 0x1d4   :  { %v871_v10 = vpack.c.bf16 %v823_v36, %v821_v35  ;;  %v849_v32 = vld [vmem:[#allocation8 + $0x3e8] sm:$0xff]  ;;  %v851_v35 = vld [vmem:[#allocation8 + $0x3f8] sm:$0xff]  ;;  %v848_v36 = vld [vmem:[#allocation8 + $0x3e0] sm:$0xff] }
 0x1d5   :  { %599 = vadd.xlane.f32.xlu0 %v598_v41  ;;  %v601_v44 = vadd.f32 %v1644_v40, %v1642_v39  ;;  %v822_v41 = vld [vmem:[#allocation8 + $0x310] sm:$0xff]  ;;  %901 = vmatpush1.bf16.msra.mxu1 %v868_v6 }
 0x1d6   :  { %902 = vmatprep.subr.bf16.mxu1 %v871_v10  ;;  %v850_v6 = vld [vmem:[#allocation8 + $0x3f0] sm:$0xff]  ;;  %v885_v10 = vpack.c.bf16 %v851_v35, %v849_v32  ;;  %v698_v32 = vld [vmem:[#allocation8 + $0x48] sm:$0xff] }
 0x1d9   :  { %602 = vadd.xlane.f32.xlu0 %v601_v44  ;;  %v870_v44 = vpack.c.bf16 %v822_v41, %v820_v38  ;;  %v884_v38 = vpack.c.bf16 %v850_v6, %v848_v36  ;;  %v690_v41 = vld [vmem:[#allocation8 + $0x8] sm:$0xff] }
 0x1db   :  { %903 = vmatpush1.bf16.msra.mxu1 %v870_v44  ;;  %v692_v44 = vld [vmem:[#allocation8 + $0x18] sm:$0xff] }
 0x1dc   :  { %904 = vmatprep.subr.bf16.mxu1 %v873_v57 }
 0x262   :  { %v600_v45 = vpop.xlane.xlu0 %599 }
 0x263   :  { %v605_v46 = vmul.f32 0.00390625, %v600_v45  ;;  %v756_v45 = vpack.c.bf16 %v692_v44, %v690_v41 }
 0x265   :  { %v1651_v47 = vsub.f32 %v1638_v37, %v605_v46  ;;  %v1654_v49 = vsub.f32 %v1640_v7, %v605_v46 }
 0x266   :  { %v603_v50 = vpop.xlane.xlu0 %602 }
 0x267   :  { %v606_v52 = vmul.f32 0.00390625, %v603_v50  ;;  %v611_v53 = vmul.f32 %v1651_v47, %v1651_v47  ;;  %v612_v48 = vmul.f32 %v1654_v49, %v1654_v49 }
 0x269   :  { %v1661_v54 = vsub.f32 %v1642_v39, %v606_v52  ;;  %v1664_v51 = vsub.f32 %v1644_v40, %v606_v52  ;;  %v615_v55 = vadd.f32 %v612_v48, %v611_v53  ;;  %v872_v39 = vpack.c.bf16 %v826_v59, %v824_v58  ;;  %v829_v40 = vld [vmem:[#allocation8 + $0x348] sm:$0xff] }
 0x26a   :  { %v875_v0 = vpack.c.bf16 %v831_v60, %v829_v40 }
 0x26b   :  { %616 = vadd.xlane.f32.xlu1 %v615_v55  ;;  %v613_v37 = vmul.f32 %v1661_v54, %v1661_v54  ;;  %v614_v7 = vmul.f32 %v1664_v51, %v1664_v51  ;;  %905 = vmatpush1.bf16.msra.mxu1 %v872_v39 }
 0x26c   :  { %906 = vmatprep.subr.bf16.mxu1 %v875_v0 }
 0x26d   :  { %v618_v42 = vadd.f32 %v614_v7, %v613_v37  ;;  %v596_v37 = vld [vmem:[%s1773_s3] sm:$0x3] }
 0x26e   :  { %v597_v7 = vld [vmem:[%s1774_s4] sm:$0x3]  ;;  %v639_v43 = vrot.slane %v596_v37, %v1634_v33 }
 0x26f   :  { %619 = vadd.xlane.f32.xlu1 %v618_v42  ;;  %907 = vmatpush1.bf16.msra.mxu1 %v874_v4  ;;  %v635_v42 = vrot.slane %v596_v37, %v1628_v31  ;;  %v654_v59 = vrot.slane %v597_v7, %v1634_v33  ;;  %v650_v40 = vrot.slane %v597_v7, %v1628_v31  ;;  %v701_v7 = vld [vmem:[#allocation8 + $0x60] sm:$0xff] }
 0x270   :  { %908 = vmatprep.subr.bf16.mxu1 %v877_v11 }
 0x273   :  { %909 = vmatpush1.bf16.msra.mxu1 %v876_v15  ;;  %v689_v15 = vld [vmem:[#allocation8] sm:$0xff] }
 0x274   :  { %910 = vmatprep.subr.bf16.mxu1 %v879_v18 }
 0x277   :  { %911 = vmatpush1.bf16.msra.mxu1 %v878_v62 }
 0x278   :  { %912 = vmatprep.subr.bf16.mxu1 %v881_v22 }
 0x27b   :  { %913 = vmatpush1.bf16.msra.mxu1 %v880_v25  ;;  %v758_v25 = vpack.c.bf16 %v696_v61, %v694_v19  ;;  %v717_v61 = vld [vmem:[#allocation8 + $0xe0] sm:$0xff] }
 0x27c   :  { %914 = vmatprep.subr.bf16.mxu1 %v883_v28 }
 0x27f   :  { %915 = vmatpush1.bf16.msra.mxu1 %v882_v34  ;;  %v700_v34 = vld [vmem:[#allocation8 + $0x58] sm:$0xff] }
 0x280   :  { %916 = vmatprep.subr.bf16.mxu1 %v885_v10  ;;  %v757_v10 = vpack.c.bf16 %v695_v27, %v693_v26 }
 0x283   :  { %917 = vmatpush1.bf16.msra.mxu1 %v884_v38 }
 0x284   :  { %929 = vmatprep.subr.bf16.mxu1 %v756_v45  ;;  %v760_v45 = vpack.c.bf16 %v700_v34, %v698_v32  ;;  %v732_v32 = vld [vmem:[#allocation8 + $0x158] sm:$0xff] }
 0x2f8   :  { %v617_v46 = vpop.xlane.xlu1 %616 }
 0x2f9   :  { %v621_v50 = vmul.f32 0.00390625, %v617_v46  ;;  %v697_v46 = vld [vmem:[#allocation8 + $0x40] sm:$0xff] }
 0x2fb   :  { %v623_v52 = vadd.f32 1e-05, %v621_v50  ;;  %v699_v50 = vld [vmem:[#allocation8 + $0x50] sm:$0xff] }
 0x2fc   :  { %v620_v53 = vpop.xlane.xlu1 %619 }
 0x2fd   :  { %1320 = vrsqrt.f32 %v623_v52  ;;  %v622_v48 = vmul.f32 0.00390625, %v620_v53  ;;  %v702_v53 = vld [vmem:[#allocation8 + $0x68] sm:$0xff] }
 0x2ff   :  { %v624_v55 = vadd.f32 1e-05, %v622_v48  ;;  %v704_v48 = vld [vmem:[#allocation8 + $0x78] sm:$0xff] }
 0x300   :  { %v762_v37 = vpack.c.bf16 %v704_v48, %v702_v53 }
 0x301   :  { %1322 = vrsqrt.f32 %v624_v55  ;;  %v759_v55 = vpack.c.bf16 %v699_v50, %v697_v46  ;;  %v734_v46 = vld [vmem:[#allocation8 + $0x168] sm:$0xff]  ;;  %v736_v50 = vld [vmem:[#allocation8 + $0x178] sm:$0xff] }
 0x302   :  { %v778_v48 = vpack.c.bf16 %v736_v50, %v734_v46  ;;  %v983_v46 = vld [vmem:[#allocation8 + $0x450] sm:$0xff]  ;;  %v986_v50 = vld [vmem:[#allocation8 + $0x468] sm:$0xff] }
 0x307   :  { %v1321_v56 = vpop.eup %1320 }
 0x308   :  { %v627_v57 = vmul.f32 %v1321_v56, %v1651_v47  ;;  %v628_v58 = vmul.f32 %v1321_v56, %v1654_v49  ;;  %v691_v49 = vld [vmem:[#allocation8 + $0x10] sm:$0xff]  ;;  %v708_v56 = vld [vmem:[#allocation8 + $0x98] sm:$0xff] }
 0x309   :  { %v755_v62 = vpack.c.bf16 %v691_v49, %v689_v15  ;;  %v718_v15 = vld [vmem:[#allocation8 + $0xe8] sm:$0xff]  ;;  %v720_v49 = vld [vmem:[#allocation8 + $0xf8] sm:$0xff] }
 0x30a   :  { %v643_v39 = vmul.f32 %v639_v43, %v628_v58  ;;  %v642_v60 = vmul.f32 %v635_v42, %v627_v57  ;;  %v770_v19 = vpack.c.bf16 %v720_v49, %v718_v15 }
 0x30b   :  { %v1323_v0 = vpop.eup %1322 }
 0x30c   :  { %v629_v2 = vmul.f32 %v1323_v0, %v1661_v54  ;;  %v630_v3 = vmul.f32 %v1323_v0, %v1664_v51  ;;  %v658_v4 = vadd.f32 %v654_v59, %v643_v39  ;;  %v657_v11 = vadd.f32 %v650_v40, %v642_v60  ;;  %v707_v39 = vld [vmem:[#allocation8 + $0x90] sm:$0xff]  ;;  %v712_v60 = vld [vmem:[#allocation8 + $0xb8] sm:$0xff] }
 0x30e   :  { %v645_v8 = vmul.f32 %v639_v43, %v630_v3  ;;  %v644_v9 = vmul.f32 %v635_v42, %v629_v2  ;;  %v662_v13 = vmax.f32 %v658_v4, 0.0  ;;  %v1684_v17 = vmax.f32 %v657_v11, 0.0  ;;  %v703_v42 = vld [vmem:[#allocation8 + $0x70] sm:$0xff]  ;;  %v706_v43 = vld [vmem:[#allocation8 + $0x88] sm:$0xff]  ;;  %v709_v3 = vld [vmem:[#allocation8 + $0xa0] sm:$0xff] }
 0x30f   :  { %v761_v57 = vpack.c.bf16 %v703_v42, %v701_v7  ;;  %v764_v58 = vpack.c.bf16 %v708_v56, %v706_v43  ;;  %v711_v4 = vld [vmem:[#allocation8 + $0xb0] sm:$0xff]  ;;  %v738_v7 = vld [vmem:[#allocation8 + $0x188] sm:$0xff]  ;;  %v740_v42 = vld [vmem:[#allocation8 + $0x198] sm:$0xff] }
 0x310   :  { %v660_v12 = vadd.f32 %v654_v59, %v645_v8  ;;  %v659_v47 = vadd.f32 %v650_v40, %v644_v9  ;;  %v666_v54 = vrot.slane %v662_v13, 7  ;;  %v678_v22 = vrot.slane %v662_v13, 1  ;;  %v705_v59 = vld [vmem:[#allocation8 + $0x80] sm:$0xff]  ;;  %v710_v40 = vld [vmem:[#allocation8 + $0xa8] sm:$0xff]  ;;  %v716_v9 = vld [vmem:[#allocation8 + $0xd8] sm:$0xff] }
 0x311   :  { %v677_v28 = vrot.slane %v1684_v17, 1  ;;  %v763_v0 = vpack.c.bf16 %v707_v39, %v705_v59  ;;  %v766_v2 = vpack.c.bf16 %v712_v60, %v710_v40  ;;  %v714_v8 = vld [vmem:[#allocation8 + $0xc8] sm:$0xff]  ;;  %v765_v11 = vpack.c.bf16 %v711_v4, %v709_v3  ;;  %v744_v39 = vld [vmem:[#allocation8 + $0x1b8] sm:$0xff] }
 0x312   :  { %v664_v16 = vmax.f32 %v660_v12, 0.0  ;;  %v1686_v18 = vmax.f32 %v659_v47, 0.0  ;;  %v768_v12 = vpack.c.bf16 %v716_v9, %v714_v8  ;;  %v715_v47 = vld [vmem:[#allocation8 + $0xd0] sm:$0xff]  ;;  %v780_v56 = vpack.c.bf16 %v740_v42, %v738_v7  ;;  %v742_v59 = vld [vmem:[#allocation8 + $0x1a8] sm:$0xff]  ;;  %v748_v4 = vld [vmem:[#allocation8 + $0x1d8] sm:$0xff] }
 0x313   :  { %v782_v60 = vpack.c.bf16 %v744_v39, %v742_v59  ;;  %v746_v3 = vld [vmem:[#allocation8 + $0x1c8] sm:$0xff]  ;;  %v992_v42 = vld [vmem:[#allocation8 + $0x498] sm:$0xff]  ;;  %v993_v39 = vld [vmem:[#allocation8 + $0x4a0] sm:$0xff] }
 0x314   :  { %v668_v1 = vrot.slane %v664_v16, 7  ;;  %v680_v51 = vrot.slane %v664_v16, 1  ;;  %v853_v20 = vpack.c.bf16 %v664_v16, %v662_v13  ;;  %v679_v23 = vrot.slane %v1686_v18, 1  ;;  %v713_v13 = vld [vmem:[#allocation8 + $0xc0] sm:$0xff]  ;;  %v990_v7 = vld [vmem:[#allocation8 + $0x488] sm:$0xff] }
 0x315   :  { %v852_v24 = vpack.c.bf16 %v1686_v18, %v1684_v17  ;;  %v767_v16 = vpack.c.bf16 %v715_v47, %v713_v13  ;;  %v784_v9 = vpack.c.bf16 %v748_v4, %v746_v3  ;;  %v750_v13 = vld [vmem:[#allocation8 + $0x1e8] sm:$0xff]  ;;  %v752_v47 = vld [vmem:[#allocation8 + $0x1f8] sm:$0xff]  ;;  %v997_v4 = vld [vmem:[#allocation8 + $0x4c0] sm:$0xff] }
 0x316   :  { %918 = vmatprep.mubr.bf16.mxu1 %v853_v20  ;;  %v670_v29 = vsel %vm121_vm0, %v666_v54, %v668_v1  ;;  %v672_v30 = vsel %vm121_vm0, %v668_v1, %v666_v54  ;;  %v1698_v36 = vsel %vm138_vm3, %v678_v22, %v680_v51  ;;  %v1702_v6 = vsel %vm138_vm3, %v680_v51, %v678_v22  ;;  %v722_v54 = vld [vmem:[#allocation8 + $0x108] sm:$0xff]  ;;  %v724_v1 = vld [vmem:[#allocation8 + $0x118] sm:$0xff]  ;;  %v721_v22 = vld [vmem:[#allocation8 + $0x100] sm:$0xff] }
 0x317   :  { %919 = vmatmul.mubr.bf16.vlgmr.msra.gmra.mrb[0].mxu1 %v852_v24  ;;  %v1284_v35 = vpack.c.bf16 %v670_v29, %v672_v30  ;;  %v1290_v38 = vpack.c.bf16 %v1702_v6, %v1698_v36  ;;  %v1708_v41 = vsel %vm138_vm3, %v677_v28, %v679_v23  ;;  %v1712_v44 = vsel %vm138_vm3, %v679_v23, %v677_v28  ;;  %v723_v23 = vld [vmem:[#allocation8 + $0x110] sm:$0xff]  ;;  %v726_v24 = vld [vmem:[#allocation8 + $0x128] sm:$0xff]  ;;  %v725_v28 = vld [vmem:[#allocation8 + $0x120] sm:$0xff] }
 0x318   :  { %930 = vmatpush1.bf16.msra.mxu1 %v755_v62  ;;  %v1293_v52 = vpack.c.bf16 %v1712_v44, %v1708_v41  ;;  %v719_v62 = vld [vmem:[#allocation8 + $0xf0] sm:$0xff]  ;;  %v772_v20 = vpack.c.bf16 %v724_v1, %v722_v54  ;;  %v771_v26 = vpack.c.bf16 %v723_v23, %v721_v22  ;;  %v730_v30 = vld [vmem:[#allocation8 + $0x148] sm:$0xff]  ;;  %v786_v49 = vpack.c.bf16 %v752_v47, %v750_v13  ;;  %v976_v54 = vld [vmem:[#allocation8 + $0x418] sm:$0xff] }
 0x319   :  { %1285 = vmatprep.mubr.msk.bf16.mxu1 %vm1587_vm4, %v1284_v35  ;;  %931 = vmatprep.subr.bf16.mxu1 %v758_v25  ;;  %v769_v51 = vpack.c.bf16 %v719_v62, %v717_v61  ;;  %v728_v25 = vld [vmem:[#allocation8 + $0x138] sm:$0xff]  ;;  %v727_v29 = vld [vmem:[#allocation8 + $0x130] sm:$0xff]  ;;  %v776_v35 = vpack.c.bf16 %v732_v32, %v730_v30  ;;  %v667_v61 = vrot.slane %v1686_v18, 7  ;;  %v974_v62 = vld [vmem:[#allocation8 + $0x408] sm:$0xff]  ;;  %v665_v1 = vrot.slane %v1684_v17, 7 }
 0x31a   :  { %v774_v27 = vpack.c.bf16 %v728_v25, %v726_v24  ;;  %v773_v34 = vpack.c.bf16 %v727_v29, %v725_v28  ;;  %v973_v22 = vld [vmem:[#allocation8 + $0x400] sm:$0xff]  ;;  %v975_v23 = vld [vmem:[#allocation8 + $0x410] sm:$0xff]  ;;  %v982_v32 = vld [vmem:[#allocation8 + $0x448] sm:$0xff]  ;;  %v1048_v6 = vpack.c.bf16 %v992_v42, %v990_v7 }
 0x31b   :  { %v669_v24 = vsel %vm121_vm0, %v665_v1, %v667_v61  ;;  %v671_v25 = vsel %vm121_vm0, %v667_v61, %v665_v1  ;;  %v1039_v18 = vpack.c.bf16 %v975_v23, %v973_v22  ;;  %v977_v17 = vld [vmem:[#allocation8 + $0x420] sm:$0xff]  ;;  %v979_v30 = vld [vmem:[#allocation8 + $0x430] sm:$0xff]  ;;  %v1010_v1 = vld [vmem:[#allocation8 + $0x528] sm:$0xff] }
 0x31c   :  { %932 = vmatpush1.bf16.msra.mxu1 %v757_v10  ;;  %v729_v10 = vld [vmem:[#allocation8 + $0x140] sm:$0xff]  ;;  %v1287_v28 = vpack.c.bf16 %v669_v24, %v671_v25  ;;  %v1011_v24 = vld [vmem:[#allocation8 + $0x530] sm:$0xff]  ;;  %v1014_v25 = vld [vmem:[#allocation8 + $0x548] sm:$0xff] }
 0x31d   :  { %933 = vmatprep.subr.bf16.mxu1 %v760_v45  ;;  %v731_v45 = vld [vmem:[#allocation8 + $0x150] sm:$0xff]  ;;  %v1001_v47 = vld [vmem:[#allocation8 + $0x4e0] sm:$0xff] }
 0x31e   :  { %v775_v53 = vpack.c.bf16 %v731_v45, %v729_v10  ;;  %v981_v45 = vld [vmem:[#allocation8 + $0x440] sm:$0xff] }
 0x31f   :  { %v1009_v23 = vld [vmem:[#allocation8 + $0x520] sm:$0xff] }
 0x320   :  { %934 = vmatpush1.bf16.msra.mxu1 %v759_v55  ;;  %v733_v55 = vld [vmem:[#allocation8 + $0x160] sm:$0xff] }
 0x321   :  { %935 = vmatprep.subr.bf16.mxu1 %v762_v37  ;;  %v735_v37 = vld [vmem:[#allocation8 + $0x170] sm:$0xff] }
 0x322   :  { %v777_v43 = vpack.c.bf16 %v735_v37, %v733_v55  ;;  %v987_v37 = vld [vmem:[#allocation8 + $0x470] sm:$0xff] }
 0x323   :  { %v1045_v36 = vpack.c.bf16 %v987_v37, %v985_v63  ;;  %v1026_v63 = vld [vmem:[#allocation8 + $0x5a8] sm:$0xff]  ;;  %v1028_v37 = vld [vmem:[#allocation8 + $0x5b8] sm:$0xff] }
 0x324   :  { %936 = vmatpush1.bf16.msra.mxu1 %v761_v57  ;;  %v737_v57 = vld [vmem:[#allocation8 + $0x180] sm:$0xff]  ;;  %v1066_v42 = vpack.c.bf16 %v1028_v37, %v1026_v63 }
 0x325   :  { %937 = vmatprep.subr.bf16.mxu1 %v764_v58  ;;  %v739_v58 = vld [vmem:[#allocation8 + $0x190] sm:$0xff] }
 0x326   :  { %v779_v40 = vpack.c.bf16 %v739_v58, %v737_v57  ;;  %v996_v57 = vld [vmem:[#allocation8 + $0x4b8] sm:$0xff] }
 0x328   :  { %938 = vmatpush1.bf16.msra.mxu1 %v763_v0  ;;  %v741_v0 = vld [vmem:[#allocation8 + $0x1a0] sm:$0xff] }
 0x329   :  { %939 = vmatprep.subr.bf16.mxu1 %v766_v2  ;;  %v743_v2 = vld [vmem:[#allocation8 + $0x1b0] sm:$0xff] }
 0x32a   :  { %v781_v8 = vpack.c.bf16 %v743_v2, %v741_v0  ;;  %v1000_v0 = vld [vmem:[#allocation8 + $0x4d8] sm:$0xff] }
 0x32c   :  { %940 = vmatpush1.bf16.msra.mxu1 %v765_v11  ;;  %v745_v11 = vld [vmem:[#allocation8 + $0x1c0] sm:$0xff] }
 0x32d   :  { %941 = vmatprep.subr.bf16.mxu1 %v768_v12  ;;  %v747_v12 = vld [vmem:[#allocation8 + $0x1d0] sm:$0xff] }
 0x32e   :  { %v783_v15 = vpack.c.bf16 %v747_v12, %v745_v11  ;;  %v1004_v11 = vld [vmem:[#allocation8 + $0x4f8] sm:$0xff] }
 0x330   :  { %942 = vmatpush1.bf16.msra.mxu1 %v767_v16  ;;  %v749_v16 = vld [vmem:[#allocation8 + $0x1e0] sm:$0xff] }
 0x331   :  { %943 = vmatprep.subr.bf16.mxu1 %v770_v19  ;;  %v751_v19 = vld [vmem:[#allocation8 + $0x1f0] sm:$0xff] }
 0x334   :  { %944 = vmatpush1.bf16.msra.mxu1 %v769_v51  ;;  %v785_v51 = vpack.c.bf16 %v751_v19, %v749_v16  ;;  %v1008_v16 = vld [vmem:[#allocation8 + $0x518] sm:$0xff] }
 0x335   :  { %945 = vmatprep.subr.bf16.mxu1 %v772_v20  ;;  %v1040_v20 = vpack.c.bf16 %v976_v54, %v974_v62  ;;  %v1005_v62 = vld [vmem:[#allocation8 + $0x500] sm:$0xff]  ;;  %v1007_v54 = vld [vmem:[#allocation8 + $0x510] sm:$0xff] }
 0x338   :  { %946 = vmatpush1.bf16.msra.mxu1 %v771_v26  ;;  %v978_v26 = vld [vmem:[#allocation8 + $0x428] sm:$0xff] }
 0x339   :  { %947 = vmatprep.subr.bf16.mxu1 %v774_v27  ;;  %v980_v27 = vld [vmem:[#allocation8 + $0x438] sm:$0xff] }
 0x33a   :  { %v1042_v29 = vpack.c.bf16 %v980_v27, %v978_v26  ;;  %v1016_v26 = vld [vmem:[#allocation8 + $0x558] sm:$0xff]  ;;  %v1057_v27 = vpack.c.bf16 %v1011_v24, %v1009_v23 }
 0x33c   :  { %948 = vmatpush1.bf16.msra.mxu1 %v773_v34  ;;  %v984_v34 = vld [vmem:[#allocation8 + $0x458] sm:$0xff] }
 0x33d   :  { %949 = vmatprep.subr.bf16.mxu1 %v776_v35  ;;  %v1041_v35 = vpack.c.bf16 %v979_v30, %v977_v17  ;;  %v1044_v10 = vpack.c.bf16 %v984_v34, %v982_v32  ;;  %v1018_v17 = vld [vmem:[#allocation8 + $0x568] sm:$0xff]  ;;  %v1020_v30 = vld [vmem:[#allocation8 + $0x578] sm:$0xff] }
 0x33e   :  { %v1062_v34 = vpack.c.bf16 %v1020_v30, %v1018_v17 }
 0x340   :  { %950 = vmatpush1.bf16.msra.mxu1 %v775_v53  ;;  %v988_v53 = vld [vmem:[#allocation8 + $0x478] sm:$0xff] }
 0x341   :  { %951 = vmatprep.subr.bf16.mxu1 %v778_v48  ;;  %v1043_v48 = vpack.c.bf16 %v983_v46, %v981_v45  ;;  %v1046_v55 = vpack.c.bf16 %v988_v53, %v986_v50  ;;  %v1022_v45 = vld [vmem:[#allocation8 + $0x588] sm:$0xff]  ;;  %v1024_v46 = vld [vmem:[#allocation8 + $0x598] sm:$0xff] }
 0x342   :  { %v1064_v53 = vpack.c.bf16 %v1024_v46, %v1022_v45  ;;  %v1135_v45 = vld [vmem:[%s1778_s8] sm:$0x3] }
 0x343   :  { %v1187_v63 = vrot.slane %v1135_v45, %v1628_v31  ;;  %v1191_v37 = vrot.slane %v1135_v45, %v1634_v33 }
 0x344   :  { %952 = vmatpush1.bf16.msra.mxu1 %v777_v43  ;;  %v991_v43 = vld [vmem:[#allocation8 + $0x490] sm:$0xff] }
 0x345   :  { %953 = vmatprep.subr.bf16.mxu1 %v780_v56  ;;  %v994_v56 = vld [vmem:[#allocation8 + $0x4a8] sm:$0xff] }
 0x346   :  { %v1050_v59 = vpack.c.bf16 %v996_v57, %v994_v56 }
 0x348   :  { %954 = vmatpush1.bf16.msra.mxu1 %v779_v40  ;;  %v995_v40 = vld [vmem:[#allocation8 + $0x4b0] sm:$0xff] }
 0x349   :  { %955 = vmatprep.subr.bf16.mxu1 %v782_v60  ;;  %v998_v60 = vld [vmem:[#allocation8 + $0x4c8] sm:$0xff]  ;;  %v1049_v2 = vpack.c.bf16 %v995_v40, %v993_v39  ;;  %v1036_v40 = vld [vmem:[#allocation8 + $0x5f8] sm:$0xff] }
 0x34a   :  { %v1052_v3 = vpack.c.bf16 %v1000_v0, %v998_v60  ;;  %v1034_v39 = vld [vmem:[#allocation8 + $0x5e8] sm:$0xff] }
 0x34b   :  { %v1070_v0 = vpack.c.bf16 %v1036_v40, %v1034_v39 }
 0x34c   :  { %956 = vmatpush1.bf16.msra.mxu1 %v781_v8  ;;  %v999_v8 = vld [vmem:[#allocation8 + $0x4d0] sm:$0xff] }
 0x34d   :  { %957 = vmatprep.subr.bf16.mxu1 %v784_v9  ;;  %v1002_v9 = vld [vmem:[#allocation8 + $0x4e8] sm:$0xff]  ;;  %v1051_v12 = vpack.c.bf16 %v999_v8, %v997_v4  ;;  %v1118_v8 = vld [vmem:[%s1776_s6] sm:$0x3] }
 0x34e   :  { %v1054_v13 = vpack.c.bf16 %v1004_v11, %v1002_v9  ;;  %v1123_v9 = vrot.slane %v1118_v8, %v1628_v31  ;;  %v1127_v11 = vrot.slane %v1118_v8, %v1634_v33 }
 0x350   :  { %958 = vmatpush1.bf16.msra.mxu1 %v783_v15  ;;  %v1003_v15 = vld [vmem:[#allocation8 + $0x4f0] sm:$0xff] }
 0x351   :  { %959 = vmatprep.subr.bf16.mxu1 %v786_v49  ;;  %v1006_v49 = vld [vmem:[#allocation8 + $0x508] sm:$0xff]  ;;  %v1053_v19 = vpack.c.bf16 %v1003_v15, %v1001_v47 }
 0x352   :  { %v1056_v61 = vpack.c.bf16 %v1008_v16, %v1006_v49 }
 0x354   :  { %960 = vmatpush1.bf16.msra.mxu1 %v785_v51  ;;  %v1012_v51 = vld [vmem:[#allocation8 + $0x538] sm:$0xff] }
 0x355   :  { %1071 = vmatprep.subr.bf16.mxu1 %v1040_v20  ;;  %v1055_v20 = vpack.c.bf16 %v1007_v54, %v1005_v62  ;;  %v1058_v22 = vpack.c.bf16 %v1012_v51, %v1010_v1 }
 0x357   :  { %1288 = vmatmul.mubr.msk.bf16.vlgmr.msra.gmra.mrb[0].mxu1 %vm1587_vm4, %v1287_v28  ;;  %v1013_v28 = vld [vmem:[#allocation8 + $0x540] sm:$0xff] }
 0x358   :  { %1072 = vmatpush1.bf16.msra.mxu1 %v1039_v18  ;;  %1291 = vmatprep.mubr.msk.bf16.mxu1 %vm1593_vm7, %v1290_v38  ;;  %v989_v38 = vld [vmem:[#allocation8 + $0x480] sm:$0xff]  ;;  %v1060_v18 = vpack.c.bf16 %v1016_v26, %v1014_v25 }
 0x359   :  { %1073 = vmatprep.subr.bf16.mxu1 %v1042_v29  ;;  %v1047_v58 = vpack.c.bf16 %v991_v43, %v989_v38  ;;  %v1015_v29 = vld [vmem:[#allocation8 + $0x550] sm:$0xff]  ;;  %v1030_v38 = vld [vmem:[#allocation8 + $0x5c8] sm:$0xff]  ;;  %v1032_v43 = vld [vmem:[#allocation8 + $0x5d8] sm:$0xff] }
 0x35a   :  { %v1059_v32 = vpack.c.bf16 %v1015_v29, %v1013_v28  ;;  %v1068_v57 = vpack.c.bf16 %v1032_v43, %v1030_v38  ;;  %v1427_v28 = vmov 0  }
 0x35b   :  { %1319 = vset.pattern.permute.xlu0 %v1427_v28 }
 0x35c   :  { %1074 = vmatpush1.bf16.msra.mxu1 %v1041_v35  ;;  %v1017_v35 = vld [vmem:[#allocation8 + $0x560] sm:$0xff] }
 0x35d   :  { %1075 = vmatprep.subr.bf16.mxu1 %v1044_v10  ;;  %v1019_v10 = vld [vmem:[#allocation8 + $0x570] sm:$0xff] }
 0x35e   :  { %v1061_v50 = vpack.c.bf16 %v1019_v10, %v1017_v35  ;;  %v1134_v10 = vld [vmem:[%s1777_s7] sm:$0x3]  ;;  %s1428_s7 = smov [#allocation9]  }
 0x35f   :  { %v1172_v46 = vrot.slane %v1134_v10, %v1628_v31  ;;  %s1261_s8 = sshll.u32 %s1428_s7, 4  ;;  %s1262_s8 = int_to_ptr.vmem [resolvable:$true] %s1261_s8 }
 0x360   :  { %1076 = vmatpush1.bf16.msra.mxu1 %v1043_v48  ;;  %v1021_v48 = vld [vmem:[#allocation8 + $0x580] sm:$0xff]  ;;  %p1399_p11 = scmp.lt.s32.totalorder %s1262_s8, %s1262_s8 }
 0x361   :  { %1077 = vmatprep.subr.bf16.mxu1 %v1046_v55  ;;  %v1023_v55 = vld [vmem:[#allocation8 + $0x590] sm:$0xff] }
 0x362   :  { %v1063_v7 = vpack.c.bf16 %v1023_v55, %v1021_v48 }
 0x364   :  { %1078 = vmatpush1.bf16.msra.mxu1 %v1045_v36  ;;  %v1025_v36 = vld [vmem:[#allocation8 + $0x5a0] sm:$0xff] }
 0x365   :  { %1079 = vmatprep.subr.bf16.mxu1 %v1048_v6  ;;  %v1027_v6 = vld [vmem:[#allocation8 + $0x5b0] sm:$0xff] }
 0x366   :  { %v1065_v56 = vpack.c.bf16 %v1027_v6, %v1025_v36 }
 0x368   :  { %1080 = vmatpush1.bf16.msra.mxu1 %v1047_v58  ;;  %v1029_v58 = vld [vmem:[#allocation8 + $0x5c0] sm:$0xff] }
 0x369   :  { %1081 = vmatprep.subr.bf16.mxu1 %v1050_v59  ;;  %v1031_v59 = vld [vmem:[#allocation8 + $0x5d0] sm:$0xff] }
 0x36a   :  { %v1067_v60 = vpack.c.bf16 %v1031_v59, %v1029_v58 }
 0x36c   :  { %1082 = vmatpush1.bf16.msra.mxu1 %v1049_v2  ;;  %v1033_v2 = vld [vmem:[#allocation8 + $0x5e0] sm:$0xff] }
 0x36d   :  { %1083 = vmatprep.subr.bf16.mxu1 %v1052_v3  ;;  %v1035_v3 = vld [vmem:[#allocation8 + $0x5f0] sm:$0xff] }
 0x36e   :  { %v1069_v4 = vpack.c.bf16 %v1035_v3, %v1033_v2 }
 0x370   :  { %1084 = vmatpush1.bf16.msra.mxu1 %v1051_v12 }
 0x371   :  { %1085 = vmatprep.subr.bf16.mxu1 %v1054_v13 }
 0x374   :  { %1086 = vmatpush1.bf16.msra.mxu1 %v1053_v19 }
 0x375   :  { %1087 = vmatprep.subr.bf16.mxu1 %v1056_v61 }
 0x378   :  { %1088 = vmatpush1.bf16.msra.mxu1 %v1055_v20 }
 0x379   :  { %1089 = vmatprep.subr.bf16.mxu1 %v1058_v22 }
 0x37c   :  { %1090 = vmatpush1.bf16.msra.mxu1 %v1057_v27 }
 0x37d   :  { %1091 = vmatprep.subr.bf16.mxu1 %v1060_v18 }
 0x380   :  { %1092 = vmatpush1.bf16.msra.mxu1 %v1059_v32 }
 0x381   :  { %1093 = vmatprep.subr.bf16.mxu1 %v1062_v34 }
 0x384   :  { %1094 = vmatpush1.bf16.msra.mxu1 %v1061_v50  ;;  %v1176_v50 = vrot.slane %v1134_v10, %v1634_v33 }
 0x385   :  { %1095 = vmatprep.subr.bf16.mxu1 %v1064_v53 }
 0x388   :  { %1096 = vmatpush1.bf16.msra.mxu1 %v1063_v7  ;;  %v1202_v7 = vld [vmem:[%s1779_s9] sm:$0x3]  ;;  %s1394_s9 = scalar_lea.vmem %s1262_s8, 32 }
 0x389   :  { %1097 = vmatprep.subr.bf16.mxu1 %v1066_v42  ;;  %p1395_p10 = scmp.ne.s32.totalorder %s1262_s8, %s1394_s9  ;;  %p1400_p12 = scmp.lt.s32.totalorder %s1394_s9, %s1394_s9 }
 0x38b   :  { %p1401_p13 = por %p1400_p12, %p1399_p11 }
 0x38c   :  { %1098 = vmatpush1.bf16.msra.mxu1 %v1065_v56  ;;  %v1207_v56 = vrot.slane %v1202_v7, %v1628_v31  ;;  %v1295_v31 = vld [vmem:[#allocation2] ss:$0 sm:$0xff] }
 0x38d   :  { %1099 = vmatprep.subr.bf16.mxu1 %v1068_v57  ;;  %v1211_v57 = vrot.slane %v1202_v7, %v1634_v33  ;;  %p1402_p0 = pnand %p1401_p13, %p1395_p10 }
 0x390   :  { %1100 = vmatpush1.bf16.msra.mxu1 %v1067_v60 }
 0x391   :  { %1101 = vmatprep.subr.bf16.mxu1 %v1070_v0 }
 0x394   :  { %1102 = vmatpush1.bf16.msra.mxu1 %v1069_v4 }
 0x397   :  { %1294 = vmatmul.mubr.msk.bf16.vlgmr.msra.gmra.mrb[0].mxu1 %vm1593_vm7, %v1293_v52 }
 0x46a   :  { %v1105_v12 = vpop.f32.mrb[0].mxu1 }
 0x46b   :  { %v1130_v13 = vadd.f32 %v1123_v9, %v1105_v12  ;;  %v1107_v47 = vpop.f32.mrb[1].mxu1 }
 0x46c   :  { %v1131_v15 = vadd.f32 %v1127_v11, %v1107_v47  ;;  %v1109_v49 = vpop.f32.mrb[2].mxu1 }
 0x46d   :  { %v1132_v16 = vadd.f32 %v1123_v9, %v1109_v49  ;;  %v1111_v19 = vpop.f32.mrb[3].mxu1  ;;  %v1241_v49 = vand.u32 127, %v86_v14 }
 0x46e   :  { %v1133_v61 = vadd.f32 %v1127_v11, %v1111_v19  ;;  %v1136_v41 = vadd.f32 %v1131_v15, %v1130_v13 }
 0x470   :  { %1137 = vadd.xlane.f32.xlu0 %v1136_v41  ;;  %v1139_v5 = vadd.f32 %v1133_v61, %v1132_v16 }
 0x472   :  { %1140 = vadd.xlane.f32.xlu1 %v1139_v5 }
 0x4fd   :  { %v1138_v44 = vpop.xlane.xlu0 %1137 }
 0x4fe   :  { %v1142_v52 = vmul.f32 0.00390625, %v1138_v44 }
 0x4ff   :  { %v1141_v62 = vpop.xlane.xlu1 %1140 }
 0x500   :  { %v1144_v54 = vsub.f32 %v1130_v13, %v1142_v52  ;;  %v1145_v1 = vsub.f32 %v1131_v15, %v1142_v52  ;;  %v1143_v51 = vmul.f32 0.00390625, %v1141_v62 }
 0x502   :  { %v1146_v20 = vsub.f32 %v1132_v16, %v1143_v51  ;;  %v1147_v22 = vsub.f32 %v1133_v61, %v1143_v51  ;;  %v1148_v23 = vmul.f32 %v1144_v54, %v1144_v54  ;;  %v1149_v24 = vmul.f32 %v1145_v1, %v1145_v1 }
 0x503   :  { %v1244_v61 = vsub.s32 %v1241_v49, %v1551_v21 }
 0x504   :  { %v1152_v25 = vadd.f32 %v1149_v24, %v1148_v23  ;;  %v1150_v26 = vmul.f32 %v1146_v20, %v1146_v20  ;;  %v1151_v27 = vmul.f32 %v1147_v22, %v1147_v22 }
 0x506   :  { %1153 = vadd.xlane.f32.xlu0 %v1152_v25  ;;  %v1155_v18 = vadd.f32 %v1151_v27, %v1150_v26 }
 0x508   :  { %1156 = vadd.xlane.f32.xlu1 %v1155_v18 }
 0x593   :  { %v1154_v29 = vpop.xlane.xlu0 %1153 }
 0x594   :  { %v1158_v17 = vmul.f32 0.00390625, %v1154_v29 }
 0x595   :  { %v1157_v30 = vpop.xlane.xlu1 %1156 }
 0x596   :  { %v1160_v32 = vadd.f32 1e-05, %v1158_v17  ;;  %v1159_v34 = vmul.f32 0.00390625, %v1157_v30 }
 0x598   :  { %1324 = vrsqrt.f32 %v1160_v32  ;;  %v1161_v35 = vadd.f32 1e-05, %v1159_v34 }
 0x59a   :  { %1326 = vrsqrt.f32 %v1161_v35 }
 0x5a2   :  { %v1325_v53 = vpop.eup %1324 }
 0x5a3   :  { %v1164_v48 = vmul.f32 %v1325_v53, %v1144_v54  ;;  %v1165_v55 = vmul.f32 %v1325_v53, %v1145_v1 }
 0x5a4   :  { %v1327_v42 = vpop.eup %1326 }
 0x5a5   :  { %v1179_v36 = vmul.f32 %v1172_v46, %v1164_v48  ;;  %v1180_v6 = vmul.f32 %v1176_v50, %v1165_v55  ;;  %v1166_v38 = vmul.f32 %v1327_v42, %v1146_v20  ;;  %v1167_v43 = vmul.f32 %v1327_v42, %v1147_v22 }
 0x5a7   :  { %v1194_v58 = vadd.f32 %v1187_v63, %v1179_v36  ;;  %v1195_v59 = vadd.f32 %v1191_v37, %v1180_v6  ;;  %v1181_v39 = vmul.f32 %v1172_v46, %v1166_v38  ;;  %v1182_v40 = vmul.f32 %v1176_v50, %v1167_v43 }
 0x5a9   :  { %v1198_v60 = vmax.f32 %v1194_v58, 0.0  ;;  %v1199_v0 = vmax.f32 %v1195_v59, 0.0  ;;  %v1196_v2 = vadd.f32 %v1187_v63, %v1181_v39  ;;  %v1197_v3 = vadd.f32 %v1191_v37, %v1182_v40 }
 0x5ab   :  { %v1214_v4 = vmul.f32 %v1207_v56, %v1198_v60  ;;  %v1215_v8 = vmul.f32 %v1211_v57, %v1199_v0  ;;  %v1200_v9 = vmax.f32 %v1196_v2, 0.0  ;;  %v1201_v11 = vmax.f32 %v1197_v3, 0.0 }
 0x5ad   :  { %v1218_v12 = vadd.f32 %v1215_v8, %v1214_v4  ;;  %v1216_v13 = vmul.f32 %v1207_v56, %v1200_v9  ;;  %v1217_v47 = vmul.f32 %v1211_v57, %v1201_v11 }
 0x5af   :  { %1219 = vadd.xlane.f32.xlu0 %v1218_v12  ;;  %v1221_v15 = vadd.f32 %v1217_v47, %v1216_v13 }
 0x5b1   :  { %1222 = vadd.xlane.f32.xlu1 %v1221_v15 }
 0x5c5   :  { %1231 = vperm.xlu0 %1319, %v1295_v31  }
 0x63c   :  { %v1220_v33 = vpop.xlane.xlu0 %1219 }
 0x63e   :  { %v1223_v16 = vpop.xlane.xlu1 %1222 }
 0x644   :  { %v1232_v19 = vpop.permute.xlu0 %1231 }
 0x645   :  { %v1234_v41 = vadd.f32 %v1232_v19, %v1220_v33  ;;  %v1235_v5 = vadd.f32 %v1232_v19, %v1223_v16 }
 0x647   :  { %v1236_v44 = vmax.f32 %v1234_v41, 0.0  ;;  %v1237_v52 = vmax.f32 %v1235_v5, 0.0 }
 0x649   :  { %v1245_v62 = vrot.slane %v1236_v44, %v1244_v61  ;;  %v1249_v54 = vrot.slane %v1237_v52, %v1244_v61 }
 0x64b   :  { %v1251_v1 = vsel %vm1250_vm8, %v1249_v54, %v1245_v62 }
 0x64c   :  { %1254 = vst.msk [vmem:[#allocation9] sm:$0x3] %vm1253_vm9, %v1251_v1 }
 0x64d   :  { %1405 = shalt.err (!%p1402_p0)
}
 0x64e   :  { %s1406_s26 = scalar_lea.hbm %s1781_s11, 32 }
 0x64f   :  { %p1407_p1 = scmp.ne.s32.totalorder %s1781_s11, %s1406_s26  ;;  %p1410_p2 = scmp.lt.u32.totalorder %s1406_s26, %s1781_s11 }
 0x651   :  { %p1412_p3 = pnand %p1410_p2, %p1407_p1 }
 0x653   :  { %1415 = shalt.err (!%p1412_p3)
}
 0x654   :  { %1264 = dma.vmem_to_hbm [thread:$0]  %s1262_s8, 32, %s1781_s11, [#allocation5]  }
 0x655   :  { %1420 = dma.done.wait [#allocation5], 32  }
 0x656   :  { %1421 = vsyncadd [#allocation5], 4294967264 }
 0x657   :  { %1268 = vsyncpa [#allocation4], 1 }
 0x658   :  { %1269 = vsyncpa [#allocation7], 1 }
 0x659   :  { %1270 = vsyncpa [#allocation5], 1 }

</bundles_post_ra>
